<compile_context>
chip_gen: v6e
topology: v6e:2x2x1
jax: 0.10.0
libtpu: 0.0.40
codegen_flags: <defaults>
</compile_context>

<pallas_src>
import numpy as np
import jax
import jax.numpy as jnp
from jax.experimental import pallas as pl
from jax.experimental.pallas import tpu as pltpu

BN_EPS = 1e-5
KSIZE, STRIDE, PAD = 3, 2, 1
CHANNELS = [2, 16, 32, 64, 128]
PMAX = CHANNELS[-1]          # lane padding for the packed per-block param rows


def _out_hw(h, w, k=KSIZE, stride=STRIDE, pad=PAD):
    return (h + 2 * pad - k) // stride + 1, (w + 2 * pad - k) // stride + 1


# ------------------------------ fused kernel -------------------------------- #

def _conv_epilogue(acc, p):
    """Conv bias + ReLU + BatchNorm2d(eval, pre-folded scale/shift). Dropout = identity (eval)."""
    y = jnp.maximum(acc + p[0:1, :], 0.0)
    return y * p[1:2, :] + p[2:3, :]


def fused_audio_classifier_kernel(x1_ref, s2_ref, s3_ref, s4_ref,
                                  w1_ref, w2_ref, w3_ref, w4_ref,
                                  p_ref, fcw_ref, fcb_ref, o_ref):
    """One sample per grid step; all inter-layer activations stay in VMEM/vregs.

    x1_ref : (1, Ho1*Wo1, 9*Cin1) bf16   wrapper-side im2col of the conv_block_1 input
    s*_ref : (9, Ho*Wo, H*W)      bf16   per-sample 0/1 tap-gather matrices (blocks 2-4)
    w*_ref : (9*Cin, Cout)        bf16   conv weights, row index = tap*Cin + cin
    p_ref  : (12, 128)            f32    rows 3b..3b+2 = (bias, bn_scale, bn_shift) of block b
    fcw_ref: (128, num_classes)   bf16   fc weight (transposed)
    fcb_ref: (1, num_classes)     f32    fc bias
    o_ref  : (1, 1, num_classes)  f32    softmax probabilities for this sample
    """
    # ---- block 1 (input already im2col'd): one 9*Cin-deep MXU matmul ----
    c1 = w1_ref.shape[1]
    acc = jnp.dot(x1_ref[0], w1_ref[...], preferred_element_type=jnp.float32)
    x = _conv_epilogue(acc, p_ref[0:3, 0:c1])                       # (M1, 16) f32

    # ---- blocks 2-4: 0/1 gather matmuls per tap, one fused 9*Cin channel matmul ----
    for bi, (s_ref, w_ref) in enumerate(
            ((s2_ref, w2_ref), (s3_ref, w3_ref), (s4_ref, w4_ref)), start=1):
        cout = w_ref.shape[1]
        xb = x.astype(jnp.bfloat16)                                  # bf16 only for the MXU
        taps = [jnp.dot(s_ref[t], xb, preferred_element_type=jnp.float32)
                for t in range(s_ref.shape[0])]                      # 9 x (M_out, Cin)
        g = jnp.concatenate(taps, axis=-1).astype(jnp.bfloat16)      # (M_out, 9*Cin)
        acc = jnp.dot(g, w_ref[...], preferred_element_type=jnp.float32)
        x = _conv_epilogue(acc, p_ref[3 * bi:3 * bi + 3, 0:cout])
        # Dropout(p=0.25): identity in eval mode.

    # ---- head: AdaptiveAvgPool2d((1,1)) over spatial rows -> Linear -> Softmax ----
    feat = jnp.mean(x, axis=0, keepdims=True)                        # (1, 128) f32
    logits = jnp.dot(feat.astype(jnp.bfloat16), fcw_ref[...],
                     preferred_element_type=jnp.float32) + fcb_ref[...]
    z = logits - jnp.max(logits, axis=-1, keepdims=True)
    e = jnp.exp(z)
    o_ref[0] = (e / jnp.sum(e, axis=-1, keepdims=True)).astype(o_ref.dtype)


# -------------------------------- wrapper ------------------------------------ #

def _im2col_conv1(x_nchw, k=KSIZE, stride=STRIDE, pad=PAD):
    """XLA-side im2col of the *network input* only: (N,C,H,W) -> (N, Ho*Wo, 9*C)."""
    n, c, h, w = x_nchw.shape
    ho, wo = _out_hw(h, w, k, stride, pad)
    xp = jnp.pad(x_nchw, ((0, 0), (0, 0), (pad, pad), (pad, pad)))
    taps = []
    for ki in range(k):
        for kj in range(k):
            taps.append(xp[:, :, ki:ki + stride * (ho - 1) + 1:stride,
                               kj:kj + stride * (wo - 1) + 1:stride])
    patches = jnp.stack(taps, axis=1)                       # (N, 9, C, Ho, Wo)
    patches = jnp.transpose(patches, (0, 3, 4, 1, 2))       # (N, Ho, Wo, 9, C)
    return patches.reshape(n, ho * wo, k * k * c)           # column = tap*C + cin


@jax.jit
def audio_classifier_forward(params, x_nchw):
    n = x_nchw.shape[0]
    x1 = _im2col_conv1(x_nchw).astype(jnp.bfloat16)          # (N, 64, 18)
    m1, kdim = x1.shape[1], x1.shape[2]
    num_classes = params["fc_b"].shape[1]

    resident = pl.BlockSpec(memory_space=pltpu.MemorySpace.VMEM)   # whole array, single DMA
    out = pl.pallas_call(
        fused_audio_classifier_kernel,
        out_shape=jax.ShapeDtypeStruct((n, 1, num_classes), jnp.float32),
        grid=(n,),
        in_specs=[pl.BlockSpec((1, m1, kdim), lambda b: (b, 0, 0)),  # per-sample im2col slab
                  resident, resident, resident,                       # S2, S3, S4
                  resident, resident, resident, resident,             # W1..W4
                  resident,                                           # packed (bias,scale,shift)
                  resident, resident],                                # fc_w, fc_b
        out_specs=pl.BlockSpec((1, 1, num_classes), lambda b: (b, 0, 0)),
        compiler_params=pltpu.CompilerParams(
            dimension_semantics=("parallel",),        # batch is per-sample independent
            vmem_limit_bytes=32 * 1024 * 1024),
    )(x1, params["S2"], params["S3"], params["S4"],
      params["W1"], params["W2"], params["W3"], params["W4"],
      params["P"], params["fc_w"], params["fc_b"])
    return out.reshape(n, num_classes)


# ------------------------ parameter / constant setup ------------------------- #

def _build_selection(h, w, k=KSIZE, stride=STRIDE, pad=PAD):
    """Per-sample 0/1 gather matrices realizing the 9 shifted (strided, padded) taps."""
    ho, wo = _out_hw(h, w, k, stride, pad)
    s = np.zeros((k * k, ho * wo, h * w), np.float32)
    for ki in range(k):
        for kj in range(k):
            t = ki * k + kj
            for oh in range(ho):
                ih = stride * oh + ki - pad
                if ih < 0 or ih >= h:
                    continue                      # zero-padded row
                for ow in range(wo):
                    iw = stride * ow + kj - pad
                    if iw < 0 or iw >= w:
                        continue                  # zero-padded col
                    s[t, oh * wo + ow, ih * w + iw] = 1.0
    return s, ho, wo


def init_params(key, in_hw=(16, 16), num_classes=10):
    cur_h, cur_w = in_hw
    params = {}
    p_rows = []
    for i in range(1, len(CHANNELS)):
        cin, cout = CHANNELS[i - 1], CHANNELS[i]
        key, kw, kb = jax.random.split(key, 3)
        fan_in = cin * KSIZE * KSIZE
        std = float(np.sqrt(2.0 / fan_in))                # kaiming_normal_, relu gain
        w_conv = jax.random.normal(kw, (cout, cin, KSIZE, KSIZE), jnp.float32) * std
        bound = 1.0 / float(np.sqrt(fan_in))
        b_conv = jax.random.uniform(kb, (cout,), jnp.float32, -bound, bound)

        # BatchNorm2d (eval) with fresh running stats, folded to per-channel scale/shift.
        gamma = jnp.ones((cout,), jnp.float32)
        beta = jnp.zeros((cout,), jnp.float32)
        r_mean = jnp.zeros((cout,), jnp.float32)
        r_var = jnp.ones((cout,), jnp.float32)
        scale = gamma / jnp.sqrt(r_var + BN_EPS)
        shift = beta - r_mean * scale

        # (Cout, Cin, 3, 3) -> (9*Cin, Cout), row = tap*Cin + cin (matches im2col / G layout).
        params[f"W{i}"] = (jnp.transpose(w_conv, (2, 3, 1, 0))
                           .reshape(KSIZE * KSIZE * cin, cout).astype(jnp.bfloat16))

        prow = jnp.zeros((3, PMAX), jnp.float32)
        prow = prow.at[0, :cout].set(b_conv).at[1, :cout].set(scale).at[2, :cout].set(shift)
        p_rows.append(prow)

        if i >= 2:   # blocks 2-4 gather their in-kernel input via per-sample 0/1 matmuls
            s_taps, _, _ = _build_selection(cur_h, cur_w)
            params[f"S{i}"] = jnp.asarray(s_taps, jnp.bfloat16)   # 0/1 is exact in bf16
        cur_h, cur_w = _out_hw(cur_h, cur_w)

    params["P"] = jnp.concatenate(p_rows, axis=0)                 # (12, 128) packed params

    key, kw, kb = jax.random.split(key, 3)
    cin = CHANNELS[-1]
    bound = 1.0 / float(np.sqrt(cin))
    params["fc_w"] = jax.random.uniform(kw, (cin, num_classes), jnp.float32,
                                        -bound, bound).astype(jnp.bfloat16)
    params["fc_b"] = jax.random.uniform(kb, (1, num_classes), jnp.float32, -bound, bound)
    return params


# ---------------------------------- main ------------------------------------- #

if __name__ == "__main__":
    key = jax.random.PRNGKey(0)
    key, kx = jax.random.split(key)
    # PyTorch-style NCHW input: batch=2, channels=2 (as the module requires), 16x16.
    x = jax.random.normal(kx, (2, 2, 16, 16), jnp.float32)
    params = init_params(key, in_hw=(16, 16), num_classes=10)

    out = jax.block_until_ready(audio_classifier_forward(params, x))

    assert out.shape == (2, 10)
    assert bool(jnp.all(jnp.isfinite(out)))
    # softmax rows sum to 1
    assert bool(jnp.allclose(jnp.sum(out, axis=-1), 1.0, atol=1e-5))
    print("KERNEL_OK")
</pallas_src>

<mosaic_0001>
module attributes {stable_mosaic.version = 11 : i64} {
  func.func @fused_audio_classifier_kernel(%arg0: i32, %arg1: memref<1x64x18xbf16, #tpu.memory_space<vmem>>, %arg2: memref<9x16x64xbf16, #tpu.memory_space<vmem>>, %arg3: memref<9x4x16xbf16, #tpu.memory_space<vmem>>, %arg4: memref<9x1x4xbf16, #tpu.memory_space<vmem>>, %arg5: memref<18x16xbf16, #tpu.memory_space<vmem>>, %arg6: memref<144x32xbf16, #tpu.memory_space<vmem>>, %arg7: memref<288x64xbf16, #tpu.memory_space<vmem>>, %arg8: memref<576x128xbf16, #tpu.memory_space<vmem>>, %arg9: memref<12x128xf32, #tpu.memory_space<vmem>>, %arg10: memref<128x10xbf16, #tpu.memory_space<vmem>>, %arg11: memref<1x10xf32, #tpu.memory_space<vmem>>, %arg12: memref<1x1x10xf32, #tpu.memory_space<vmem>>) attributes {dimension_semantics = [#tpu.dimension_semantics<parallel>], iteration_bounds = array<i64: 2>, scalar_prefetch = 0 : i64, scratch_operands = 0 : i64, tpu.core_type = #tpu.core_type<tc>, window_params = [{transform_indices = @transform_0, window_bounds = array<i64: 1, 64, 18>}, {pipeline_mode = #tpu.pipeline_mode<synchronous>, transform_indices = @transform_1, window_bounds = array<i64: 9, 16, 64>}, {pipeline_mode = #tpu.pipeline_mode<synchronous>, transform_indices = @transform_2, window_bounds = array<i64: 9, 4, 16>}, {pipeline_mode = #tpu.pipeline_mode<synchronous>, transform_indices = @transform_3, window_bounds = array<i64: 9, 1, 4>}, {pipeline_mode = #tpu.pipeline_mode<synchronous>, transform_indices = @transform_4, window_bounds = array<i64: 18, 16>}, {pipeline_mode = #tpu.pipeline_mode<synchronous>, transform_indices = @transform_5, window_bounds = array<i64: 144, 32>}, {pipeline_mode = #tpu.pipeline_mode<synchronous>, transform_indices = @transform_6, window_bounds = array<i64: 288, 64>}, {pipeline_mode = #tpu.pipeline_mode<synchronous>, transform_indices = @transform_7, window_bounds = array<i64: 576, 128>}, {pipeline_mode = #tpu.pipeline_mode<synchronous>, transform_indices = @transform_8, window_bounds = array<i64: 12, 128>}, {pipeline_mode = #tpu.pipeline_mode<synchronous>, transform_indices = @transform_9, window_bounds = array<i64: 128, 10>}, {pipeline_mode = #tpu.pipeline_mode<synchronous>, transform_indices = @transform_10, window_bounds = array<i64: 1, 10>}, {transform_indices = @transform_11, window_bounds = array<i64: 1, 1, 10>}]} {
    %c0 = arith.constant 0 : index
    %c0_0 = arith.constant 0 : index
    %c0_1 = arith.constant 0 : index
    %0 = vector.load %arg1[%c0, %c0_0, %c0_1] : memref<1x64x18xbf16, #tpu.memory_space<vmem>>, vector<1x64x18xbf16>
    %1 = vector.shape_cast %0 : vector<1x64x18xbf16> to vector<64x18xbf16>
    %c0_2 = arith.constant 0 : index
    %c0_3 = arith.constant 0 : index
    %2 = vector.load %arg5[%c0_2, %c0_3] : memref<18x16xbf16, #tpu.memory_space<vmem>>, vector<18x16xbf16>
    %cst = arith.constant dense<0.000000e+00> : vector<64x16xf32>
    %3 = tpu.matmul %1, %2, %cst {dimension_numbers = #tpu.dot_dimension_numbers<[1], [0], [0], [1], [0, 0, 1, 1], [], []>} : vector<64x18xbf16>, vector<18x16xbf16>, vector<64x16xf32> -> vector<64x16xf32>
    %c0_4 = arith.constant 0 : index
    %c0_5 = arith.constant 0 : index
    %4 = vector.load %arg9[%c0_4, %c0_5] : memref<12x128xf32, #tpu.memory_space<vmem>>, vector<3x16xf32>
    %5 = vector.extract_strided_slice %4 {offsets = [0, 0], sizes = [1, 16], strides = [1, 1]} : vector<3x16xf32> to vector<1x16xf32>
    %6 = vector.broadcast %5 : vector<1x16xf32> to vector<64x16xf32>
    %7 = arith.addf %3, %6 : vector<64x16xf32>
    %cst_6 = arith.constant 0.000000e+00 : f32
    %8 = vector.broadcast %cst_6 : f32 to vector<64x16xf32>
    %9 = arith.maximumf %7, %8 : vector<64x16xf32>
    %10 = vector.extract_strided_slice %4 {offsets = [1, 0], sizes = [1, 16], strides = [1, 1]} : vector<3x16xf32> to vector<1x16xf32>
    %11 = vector.broadcast %10 : vector<1x16xf32> to vector<64x16xf32>
    %12 = arith.mulf %9, %11 : vector<64x16xf32>
    %13 = vector.extract_strided_slice %4 {offsets = [2, 0], sizes = [1, 16], strides = [1, 1]} : vector<3x16xf32> to vector<1x16xf32>
    %14 = vector.broadcast %13 : vector<1x16xf32> to vector<64x16xf32>
    %15 = arith.addf %12, %14 : vector<64x16xf32>
    %16 = arith.truncf %15 : vector<64x16xf32> to vector<64x16xbf16>
    %c0_7 = arith.constant 0 : index
    %c0_8 = arith.constant 0 : index
    %c0_9 = arith.constant 0 : index
    %17 = vector.load %arg2[%c0_7, %c0_8, %c0_9] : memref<9x16x64xbf16, #tpu.memory_space<vmem>>, vector<1x16x64xbf16>
    %18 = vector.shape_cast %17 : vector<1x16x64xbf16> to vector<16x64xbf16>
    %cst_10 = arith.constant dense<0.000000e+00> : vector<16x16xf32>
    %19 = tpu.matmul %18, %16, %cst_10 {dimension_numbers = #tpu.dot_dimension_numbers<[1], [0], [0], [1], [0, 0, 1, 1], [], []>} : vector<16x64xbf16>, vector<64x16xbf16>, vector<16x16xf32> -> vector<16x16xf32>
    %c1 = arith.constant 1 : index
    %c0_11 = arith.constant 0 : index
    %c0_12 = arith.constant 0 : index
    %20 = vector.load %arg2[%c1, %c0_11, %c0_12] : memref<9x16x64xbf16, #tpu.memory_space<vmem>>, vector<1x16x64xbf16>
    %21 = vector.shape_cast %20 : vector<1x16x64xbf16> to vector<16x64xbf16>
    %cst_13 = arith.constant dense<0.000000e+00> : vector<16x16xf32>
    %22 = tpu.matmul %21, %16, %cst_13 {dimension_numbers = #tpu.dot_dimension_numbers<[1], [0], [0], [1], [0, 0, 1, 1], [], []>} : vector<16x64xbf16>, vector<64x16xbf16>, vector<16x16xf32> -> vector<16x16xf32>
    %c2 = arith.constant 2 : index
    %c0_14 = arith.constant 0 : index
    %c0_15 = arith.constant 0 : index
    %23 = vector.load %arg2[%c2, %c0_14, %c0_15] : memref<9x16x64xbf16, #tpu.memory_space<vmem>>, vector<1x16x64xbf16>
    %24 = vector.shape_cast %23 : vector<1x16x64xbf16> to vector<16x64xbf16>
    %cst_16 = arith.constant dense<0.000000e+00> : vector<16x16xf32>
    %25 = tpu.matmul %24, %16, %cst_16 {dimension_numbers = #tpu.dot_dimension_numbers<[1], [0], [0], [1], [0, 0, 1, 1], [], []>} : vector<16x64xbf16>, vector<64x16xbf16>, vector<16x16xf32> -> vector<16x16xf32>
    %c3 = arith.constant 3 : index
    %c0_17 = arith.constant 0 : index
    %c0_18 = arith.constant 0 : index
    %26 = vector.load %arg2[%c3, %c0_17, %c0_18] : memref<9x16x64xbf16, #tpu.memory_space<vmem>>, vector<1x16x64xbf16>
    %27 = vector.shape_cast %26 : vector<1x16x64xbf16> to vector<16x64xbf16>
    %cst_19 = arith.constant dense<0.000000e+00> : vector<16x16xf32>
    %28 = tpu.matmul %27, %16, %cst_19 {dimension_numbers = #tpu.dot_dimension_numbers<[1], [0], [0], [1], [0, 0, 1, 1], [], []>} : vector<16x64xbf16>, vector<64x16xbf16>, vector<16x16xf32> -> vector<16x16xf32>
    %c4 = arith.constant 4 : index
    %c0_20 = arith.constant 0 : index
    %c0_21 = arith.constant 0 : index
    %29 = vector.load %arg2[%c4, %c0_20, %c0_21] : memref<9x16x64xbf16, #tpu.memory_space<vmem>>, vector<1x16x64xbf16>
    %30 = vector.shape_cast %29 : vector<1x16x64xbf16> to vector<16x64xbf16>
    %cst_22 = arith.constant dense<0.000000e+00> : vector<16x16xf32>
    %31 = tpu.matmul %30, %16, %cst_22 {dimension_numbers = #tpu.dot_dimension_numbers<[1], [0], [0], [1], [0, 0, 1, 1], [], []>} : vector<16x64xbf16>, vector<64x16xbf16>, vector<16x16xf32> -> vector<16x16xf32>
    %c5 = arith.constant 5 : index
    %c0_23 = arith.constant 0 : index
    %c0_24 = arith.constant 0 : index
    %32 = vector.load %arg2[%c5, %c0_23, %c0_24] : memref<9x16x64xbf16, #tpu.memory_space<vmem>>, vector<1x16x64xbf16>
    %33 = vector.shape_cast %32 : vector<1x16x64xbf16> to vector<16x64xbf16>
    %cst_25 = arith.constant dense<0.000000e+00> : vector<16x16xf32>
    %34 = tpu.matmul %33, %16, %cst_25 {dimension_numbers = #tpu.dot_dimension_numbers<[1], [0], [0], [1], [0, 0, 1, 1], [], []>} : vector<16x64xbf16>, vector<64x16xbf16>, vector<16x16xf32> -> vector<16x16xf32>
    %c6 = arith.constant 6 : index
    %c0_26 = arith.constant 0 : index
    %c0_27 = arith.constant 0 : index
    %35 = vector.load %arg2[%c6, %c0_26, %c0_27] : memref<9x16x64xbf16, #tpu.memory_space<vmem>>, vector<1x16x64xbf16>
    %36 = vector.shape_cast %35 : vector<1x16x64xbf16> to vector<16x64xbf16>
    %cst_28 = arith.constant dense<0.000000e+00> : vector<16x16xf32>
    %37 = tpu.matmul %36, %16, %cst_28 {dimension_numbers = #tpu.dot_dimension_numbers<[1], [0], [0], [1], [0, 0, 1, 1], [], []>} : vector<16x64xbf16>, vector<64x16xbf16>, vector<16x16xf32> -> vector<16x16xf32>
    %c7 = arith.constant 7 : index
    %c0_29 = arith.constant 0 : index
    %c0_30 = arith.constant 0 : index
    %38 = vector.load %arg2[%c7, %c0_29, %c0_30] : memref<9x16x64xbf16, #tpu.memory_space<vmem>>, vector<1x16x64xbf16>
    %39 = vector.shape_cast %38 : vector<1x16x64xbf16> to vector<16x64xbf16>
    %cst_31 = arith.constant dense<0.000000e+00> : vector<16x16xf32>
    %40 = tpu.matmul %39, %16, %cst_31 {dimension_numbers = #tpu.dot_dimension_numbers<[1], [0], [0], [1], [0, 0, 1, 1], [], []>} : vector<16x64xbf16>, vector<64x16xbf16>, vector<16x16xf32> -> vector<16x16xf32>
    %c8 = arith.constant 8 : index
    %c0_32 = arith.constant 0 : index
    %c0_33 = arith.constant 0 : index
    %41 = vector.load %arg2[%c8, %c0_32, %c0_33] : memref<9x16x64xbf16, #tpu.memory_space<vmem>>, vector<1x16x64xbf16>
    %42 = vector.shape_cast %41 : vector<1x16x64xbf16> to vector<16x64xbf16>
    %cst_34 = arith.constant dense<0.000000e+00> : vector<16x16xf32>
    %43 = tpu.matmul %42, %16, %cst_34 {dimension_numbers = #tpu.dot_dimension_numbers<[1], [0], [0], [1], [0, 0, 1, 1], [], []>} : vector<16x64xbf16>, vector<64x16xbf16>, vector<16x16xf32> -> vector<16x16xf32>
    %44 = tpu.concatenate %19, %22, %25, %28, %31, %34, %37, %40, %43 in 1 : vector<16x16xf32>, vector<16x16xf32>, vector<16x16xf32>, vector<16x16xf32>, vector<16x16xf32>, vector<16x16xf32>, vector<16x16xf32>, vector<16x16xf32>, vector<16x16xf32> -> vector<16x144xf32>
    %45 = arith.truncf %44 : vector<16x144xf32> to vector<16x144xbf16>
    %c0_35 = arith.constant 0 : index
    %c0_36 = arith.constant 0 : index
    %46 = vector.load %arg6[%c0_35, %c0_36] : memref<144x32xbf16, #tpu.memory_space<vmem>>, vector<144x32xbf16>
    %cst_37 = arith.constant dense<0.000000e+00> : vector<16x32xf32>
    %47 = tpu.matmul %45, %46, %cst_37 {dimension_numbers = #tpu.dot_dimension_numbers<[1], [0], [0], [1], [0, 0, 1, 1], [], []>} : vector<16x144xbf16>, vector<144x32xbf16>, vector<16x32xf32> -> vector<16x32xf32>
    %c3_38 = arith.constant 3 : index
    %c0_39 = arith.constant 0 : index
    %48 = vector.load %arg9[%c3_38, %c0_39] : memref<12x128xf32, #tpu.memory_space<vmem>>, vector<3x32xf32>
    %49 = vector.extract_strided_slice %48 {offsets = [0, 0], sizes = [1, 32], strides = [1, 1]} : vector<3x32xf32> to vector<1x32xf32>
    %50 = vector.broadcast %49 : vector<1x32xf32> to vector<16x32xf32>
    %51 = arith.addf %47, %50 : vector<16x32xf32>
    %cst_40 = arith.constant 0.000000e+00 : f32
    %52 = vector.broadcast %cst_40 : f32 to vector<16x32xf32>
    %53 = arith.maximumf %51, %52 : vector<16x32xf32>
    %54 = vector.extract_strided_slice %48 {offsets = [1, 0], sizes = [1, 32], strides = [1, 1]} : vector<3x32xf32> to vector<1x32xf32>
    %55 = vector.broadcast %54 : vector<1x32xf32> to vector<16x32xf32>
    %56 = arith.mulf %53, %55 : vector<16x32xf32>
    %57 = vector.extract_strided_slice %48 {offsets = [2, 0], sizes = [1, 32], strides = [1, 1]} : vector<3x32xf32> to vector<1x32xf32>
    %58 = vector.broadcast %57 : vector<1x32xf32> to vector<16x32xf32>
    %59 = arith.addf %56, %58 : vector<16x32xf32>
    %60 = arith.truncf %59 : vector<16x32xf32> to vector<16x32xbf16>
    %c0_41 = arith.constant 0 : index
    %c0_42 = arith.constant 0 : index
    %c0_43 = arith.constant 0 : index
    %61 = vector.load %arg3[%c0_41, %c0_42, %c0_43] : memref<9x4x16xbf16, #tpu.memory_space<vmem>>, vector<1x4x16xbf16>
    %62 = vector.shape_cast %61 : vector<1x4x16xbf16> to vector<4x16xbf16>
    %cst_44 = arith.constant dense<0.000000e+00> : vector<4x32xf32>
    %63 = tpu.matmul %62, %60, %cst_44 {dimension_numbers = #tpu.dot_dimension_numbers<[1], [0], [0], [1], [0, 0, 1, 1], [], []>} : vector<4x16xbf16>, vector<16x32xbf16>, vector<4x32xf32> -> vector<4x32xf32>
    %c1_45 = arith.constant 1 : index
    %c0_46 = arith.constant 0 : index
    %c0_47 = arith.constant 0 : index
    %64 = vector.load %arg3[%c1_45, %c0_46, %c0_47] : memref<9x4x16xbf16, #tpu.memory_space<vmem>>, vector<1x4x16xbf16>
    %65 = vector.shape_cast %64 : vector<1x4x16xbf16> to vector<4x16xbf16>
    %cst_48 = arith.constant dense<0.000000e+00> : vector<4x32xf32>
    %66 = tpu.matmul %65, %60, %cst_48 {dimension_numbers = #tpu.dot_dimension_numbers<[1], [0], [0], [1], [0, 0, 1, 1], [], []>} : vector<4x16xbf16>, vector<16x32xbf16>, vector<4x32xf32> -> vector<4x32xf32>
    %c2_49 = arith.constant 2 : index
    %c0_50 = arith.constant 0 : index
    %c0_51 = arith.constant 0 : index
    %67 = vector.load %arg3[%c2_49, %c0_50, %c0_51] : memref<9x4x16xbf16, #tpu.memory_space<vmem>>, vector<1x4x16xbf16>
    %68 = vector.shape_cast %67 : vector<1x4x16xbf16> to vector<4x16xbf16>
    %cst_52 = arith.constant dense<0.000000e+00> : vector<4x32xf32>
    %69 = tpu.matmul %68, %60, %cst_52 {dimension_numbers = #tpu.dot_dimension_numbers<[1], [0], [0], [1], [0, 0, 1, 1], [], []>} : vector<4x16xbf16>, vector<16x32xbf16>, vector<4x32xf32> -> vector<4x32xf32>
    %c3_53 = arith.constant 3 : index
    %c0_54 = arith.constant 0 : index
    %c0_55 = arith.constant 0 : index
    %70 = vector.load %arg3[%c3_53, %c0_54, %c0_55] : memref<9x4x16xbf16, #tpu.memory_space<vmem>>, vector<1x4x16xbf16>
    %71 = vector.shape_cast %70 : vector<1x4x16xbf16> to vector<4x16xbf16>
    %cst_56 = arith.constant dense<0.000000e+00> : vector<4x32xf32>
    %72 = tpu.matmul %71, %60, %cst_56 {dimension_numbers = #tpu.dot_dimension_numbers<[1], [0], [0], [1], [0, 0, 1, 1], [], []>} : vector<4x16xbf16>, vector<16x32xbf16>, vector<4x32xf32> -> vector<4x32xf32>
    %c4_57 = arith.constant 4 : index
    %c0_58 = arith.constant 0 : index
    %c0_59 = arith.constant 0 : index
    %73 = vector.load %arg3[%c4_57, %c0_58, %c0_59] : memref<9x4x16xbf16, #tpu.memory_space<vmem>>, vector<1x4x16xbf16>
    %74 = vector.shape_cast %73 : vector<1x4x16xbf16> to vector<4x16xbf16>
    %cst_60 = arith.constant dense<0.000000e+00> : vector<4x32xf32>
    %75 = tpu.matmul %74, %60, %cst_60 {dimension_numbers = #tpu.dot_dimension_numbers<[1], [0], [0], [1], [0, 0, 1, 1], [], []>} : vector<4x16xbf16>, vector<16x32xbf16>, vector<4x32xf32> -> vector<4x32xf32>
    %c5_61 = arith.constant 5 : index
    %c0_62 = arith.constant 0 : index
    %c0_63 = arith.constant 0 : index
    %76 = vector.load %arg3[%c5_61, %c0_62, %c0_63] : memref<9x4x16xbf16, #tpu.memory_space<vmem>>, vector<1x4x16xbf16>
    %77 = vector.shape_cast %76 : vector<1x4x16xbf16> to vector<4x16xbf16>
    %cst_64 = arith.constant dense<0.000000e+00> : vector<4x32xf32>
    %78 = tpu.matmul %77, %60, %cst_64 {dimension_numbers = #tpu.dot_dimension_numbers<[1], [0], [0], [1], [0, 0, 1, 1], [], []>} : vector<4x16xbf16>, vector<16x32xbf16>, vector<4x32xf32> -> vector<4x32xf32>
    %c6_65 = arith.constant 6 : index
    %c0_66 = arith.constant 0 : index
    %c0_67 = arith.constant 0 : index
    %79 = vector.load %arg3[%c6_65, %c0_66, %c0_67] : memref<9x4x16xbf16, #tpu.memory_space<vmem>>, vector<1x4x16xbf16>
    %80 = vector.shape_cast %79 : vector<1x4x16xbf16> to vector<4x16xbf16>
    %cst_68 = arith.constant dense<0.000000e+00> : vector<4x32xf32>
    %81 = tpu.matmul %80, %60, %cst_68 {dimension_numbers = #tpu.dot_dimension_numbers<[1], [0], [0], [1], [0, 0, 1, 1], [], []>} : vector<4x16xbf16>, vector<16x32xbf16>, vector<4x32xf32> -> vector<4x32xf32>
    %c7_69 = arith.constant 7 : index
    %c0_70 = arith.constant 0 : index
    %c0_71 = arith.constant 0 : index
    %82 = vector.load %arg3[%c7_69, %c0_70, %c0_71] : memref<9x4x16xbf16, #tpu.memory_space<vmem>>, vector<1x4x16xbf16>
    %83 = vector.shape_cast %82 : vector<1x4x16xbf16> to vector<4x16xbf16>
    %cst_72 = arith.constant dense<0.000000e+00> : vector<4x32xf32>
    %84 = tpu.matmul %83, %60, %cst_72 {dimension_numbers = #tpu.dot_dimension_numbers<[1], [0], [0], [1], [0, 0, 1, 1], [], []>} : vector<4x16xbf16>, vector<16x32xbf16>, vector<4x32xf32> -> vector<4x32xf32>
    %c8_73 = arith.constant 8 : index
    %c0_74 = arith.constant 0 : index
    %c0_75 = arith.constant 0 : index
    %85 = vector.load %arg3[%c8_73, %c0_74, %c0_75] : memref<9x4x16xbf16, #tpu.memory_space<vmem>>, vector<1x4x16xbf16>
    %86 = vector.shape_cast %85 : vector<1x4x16xbf16> to vector<4x16xbf16>
    %cst_76 = arith.constant dense<0.000000e+00> : vector<4x32xf32>
    %87 = tpu.matmul %86, %60, %cst_76 {dimension_numbers = #tpu.dot_dimension_numbers<[1], [0], [0], [1], [0, 0, 1, 1], [], []>} : vector<4x16xbf16>, vector<16x32xbf16>, vector<4x32xf32> -> vector<4x32xf32>
    %88 = tpu.concatenate %63, %66, %69, %72, %75, %78, %81, %84, %87 in 1 : vector<4x32xf32>, vector<4x32xf32>, vector<4x32xf32>, vector<4x32xf32>, vector<4x32xf32>, vector<4x32xf32>, vector<4x32xf32>, vector<4x32xf32>, vector<4x32xf32> -> vector<4x288xf32>
    %89 = arith.truncf %88 : vector<4x288xf32> to vector<4x288xbf16>
    %c0_77 = arith.constant 0 : index
    %c0_78 = arith.constant 0 : index
    %90 = vector.load %arg7[%c0_77, %c0_78] : memref<288x64xbf16, #tpu.memory_space<vmem>>, vector<288x64xbf16>
    %cst_79 = arith.constant dense<0.000000e+00> : vector<4x64xf32>
    %91 = tpu.matmul %89, %90, %cst_79 {dimension_numbers = #tpu.dot_dimension_numbers<[1], [0], [0], [1], [0, 0, 1, 1], [], []>} : vector<4x288xbf16>, vector<288x64xbf16>, vector<4x64xf32> -> vector<4x64xf32>
    %c6_80 = arith.constant 6 : index
    %c0_81 = arith.constant 0 : index
    %92 = vector.load %arg9[%c6_80, %c0_81] : memref<12x128xf32, #tpu.memory_space<vmem>>, vector<3x64xf32>
    %93 = vector.extract_strided_slice %92 {offsets = [0, 0], sizes = [1, 64], strides = [1, 1]} : vector<3x64xf32> to vector<1x64xf32>
    %94 = vector.broadcast %93 : vector<1x64xf32> to vector<4x64xf32>
    %95 = arith.addf %91, %94 : vector<4x64xf32>
    %cst_82 = arith.constant 0.000000e+00 : f32
    %96 = vector.broadcast %cst_82 : f32 to vector<4x64xf32>
    %97 = arith.maximumf %95, %96 : vector<4x64xf32>
    %98 = vector.extract_strided_slice %92 {offsets = [1, 0], sizes = [1, 64], strides = [1, 1]} : vector<3x64xf32> to vector<1x64xf32>
    %99 = vector.broadcast %98 : vector<1x64xf32> to vector<4x64xf32>
    %100 = arith.mulf %97, %99 : vector<4x64xf32>
    %101 = vector.extract_strided_slice %92 {offsets = [2, 0], sizes = [1, 64], strides = [1, 1]} : vector<3x64xf32> to vector<1x64xf32>
    %102 = vector.broadcast %101 : vector<1x64xf32> to vector<4x64xf32>
    %103 = arith.addf %100, %102 : vector<4x64xf32>
    %104 = arith.truncf %103 : vector<4x64xf32> to vector<4x64xbf16>
    %c0_83 = arith.constant 0 : index
    %c0_84 = arith.constant 0 : index
    %c0_85 = arith.constant 0 : index
    %105 = vector.load %arg4[%c0_83, %c0_84, %c0_85] : memref<9x1x4xbf16, #tpu.memory_space<vmem>>, vector<1x1x4xbf16>
    %106 = vector.shape_cast %105 : vector<1x1x4xbf16> to vector<1x4xbf16>
    %cst_86 = arith.constant dense<0.000000e+00> : vector<1x64xf32>
    %107 = tpu.matmul %106, %104, %cst_86 {dimension_numbers = #tpu.dot_dimension_numbers<[1], [0], [0], [1], [0, 0, 1, 1], [], []>} : vector<1x4xbf16>, vector<4x64xbf16>, vector<1x64xf32> -> vector<1x64xf32>
    %c1_87 = arith.constant 1 : index
    %c0_88 = arith.constant 0 : index
    %c0_89 = arith.constant 0 : index
    %108 = vector.load %arg4[%c1_87, %c0_88, %c0_89] : memref<9x1x4xbf16, #tpu.memory_space<vmem>>, vector<1x1x4xbf16>
    %109 = vector.shape_cast %108 : vector<1x1x4xbf16> to vector<1x4xbf16>
    %cst_90 = arith.constant dense<0.000000e+00> : vector<1x64xf32>
    %110 = tpu.matmul %109, %104, %cst_90 {dimension_numbers = #tpu.dot_dimension_numbers<[1], [0], [0], [1], [0, 0, 1, 1], [], []>} : vector<1x4xbf16>, vector<4x64xbf16>, vector<1x64xf32> -> vector<1x64xf32>
    %c2_91 = arith.constant 2 : index
    %c0_92 = arith.constant 0 : index
    %c0_93 = arith.constant 0 : index
    %111 = vector.load %arg4[%c2_91, %c0_92, %c0_93] : memref<9x1x4xbf16, #tpu.memory_space<vmem>>, vector<1x1x4xbf16>
    %112 = vector.shape_cast %111 : vector<1x1x4xbf16> to vector<1x4xbf16>
    %cst_94 = arith.constant dense<0.000000e+00> : vector<1x64xf32>
    %113 = tpu.matmul %112, %104, %cst_94 {dimension_numbers = #tpu.dot_dimension_numbers<[1], [0], [0], [1], [0, 0, 1, 1], [], []>} : vector<1x4xbf16>, vector<4x64xbf16>, vector<1x64xf32> -> vector<1x64xf32>
    %c3_95 = arith.constant 3 : index
    %c0_96 = arith.constant 0 : index
    %c0_97 = arith.constant 0 : index
    %114 = vector.load %arg4[%c3_95, %c0_96, %c0_97] : memref<9x1x4xbf16, #tpu.memory_space<vmem>>, vector<1x1x4xbf16>
    %115 = vector.shape_cast %114 : vector<1x1x4xbf16> to vector<1x4xbf16>
    %cst_98 = arith.constant dense<0.000000e+00> : vector<1x64xf32>
    %116 = tpu.matmul %115, %104, %cst_98 {dimension_numbers = #tpu.dot_dimension_numbers<[1], [0], [0], [1], [0, 0, 1, 1], [], []>} : vector<1x4xbf16>, vector<4x64xbf16>, vector<1x64xf32> -> vector<1x64xf32>
    %c4_99 = arith.constant 4 : index
    %c0_100 = arith.constant 0 : index
    %c0_101 = arith.constant 0 : index
    %117 = vector.load %arg4[%c4_99, %c0_100, %c0_101] : memref<9x1x4xbf16, #tpu.memory_space<vmem>>, vector<1x1x4xbf16>
    %118 = vector.shape_cast %117 : vector<1x1x4xbf16> to vector<1x4xbf16>
    %cst_102 = arith.constant dense<0.000000e+00> : vector<1x64xf32>
    %119 = tpu.matmul %118, %104, %cst_102 {dimension_numbers = #tpu.dot_dimension_numbers<[1], [0], [0], [1], [0, 0, 1, 1], [], []>} : vector<1x4xbf16>, vector<4x64xbf16>, vector<1x64xf32> -> vector<1x64xf32>
    %c5_103 = arith.constant 5 : index
    %c0_104 = arith.constant 0 : index
    %c0_105 = arith.constant 0 : index
    %120 = vector.load %arg4[%c5_103, %c0_104, %c0_105] : memref<9x1x4xbf16, #tpu.memory_space<vmem>>, vector<1x1x4xbf16>
    %121 = vector.shape_cast %120 : vector<1x1x4xbf16> to vector<1x4xbf16>
    %cst_106 = arith.constant dense<0.000000e+00> : vector<1x64xf32>
    %122 = tpu.matmul %121, %104, %cst_106 {dimension_numbers = #tpu.dot_dimension_numbers<[1], [0], [0], [1], [0, 0, 1, 1], [], []>} : vector<1x4xbf16>, vector<4x64xbf16>, vector<1x64xf32> -> vector<1x64xf32>
    %c6_107 = arith.constant 6 : index
    %c0_108 = arith.constant 0 : index
    %c0_109 = arith.constant 0 : index
    %123 = vector.load %arg4[%c6_107, %c0_108, %c0_109] : memref<9x1x4xbf16, #tpu.memory_space<vmem>>, vector<1x1x4xbf16>
    %124 = vector.shape_cast %123 : vector<1x1x4xbf16> to vector<1x4xbf16>
    %cst_110 = arith.constant dense<0.000000e+00> : vector<1x64xf32>
    %125 = tpu.matmul %124, %104, %cst_110 {dimension_numbers = #tpu.dot_dimension_numbers<[1], [0], [0], [1], [0, 0, 1, 1], [], []>} : vector<1x4xbf16>, vector<4x64xbf16>, vector<1x64xf32> -> vector<1x64xf32>
    %c7_111 = arith.constant 7 : index
    %c0_112 = arith.constant 0 : index
    %c0_113 = arith.constant 0 : index
    %126 = vector.load %arg4[%c7_111, %c0_112, %c0_113] : memref<9x1x4xbf16, #tpu.memory_space<vmem>>, vector<1x1x4xbf16>
    %127 = vector.shape_cast %126 : vector<1x1x4xbf16> to vector<1x4xbf16>
    %cst_114 = arith.constant dense<0.000000e+00> : vector<1x64xf32>
    %128 = tpu.matmul %127, %104, %cst_114 {dimension_numbers = #tpu.dot_dimension_numbers<[1], [0], [0], [1], [0, 0, 1, 1], [], []>} : vector<1x4xbf16>, vector<4x64xbf16>, vector<1x64xf32> -> vector<1x64xf32>
    %c8_115 = arith.constant 8 : index
    %c0_116 = arith.constant 0 : index
    %c0_117 = arith.constant 0 : index
    %129 = vector.load %arg4[%c8_115, %c0_116, %c0_117] : memref<9x1x4xbf16, #tpu.memory_space<vmem>>, vector<1x1x4xbf16>
    %130 = vector.shape_cast %129 : vector<1x1x4xbf16> to vector<1x4xbf16>
    %cst_118 = arith.constant dense<0.000000e+00> : vector<1x64xf32>
    %131 = tpu.matmul %130, %104, %cst_118 {dimension_numbers = #tpu.dot_dimension_numbers<[1], [0], [0], [1], [0, 0, 1, 1], [], []>} : vector<1x4xbf16>, vector<4x64xbf16>, vector<1x64xf32> -> vector<1x64xf32>
    %132 = tpu.concatenate %107, %110, %113, %116, %119, %122, %125, %128, %131 in 1 : vector<1x64xf32>, vector<1x64xf32>, vector<1x64xf32>, vector<1x64xf32>, vector<1x64xf32>, vector<1x64xf32>, vector<1x64xf32>, vector<1x64xf32>, vector<1x64xf32> -> vector<1x576xf32>
    %133 = arith.truncf %132 : vector<1x576xf32> to vector<1x576xbf16>
    %c0_119 = arith.constant 0 : index
    %c0_120 = arith.constant 0 : index
    %134 = vector.load %arg8[%c0_119, %c0_120] : memref<576x128xbf16, #tpu.memory_space<vmem>>, vector<576x128xbf16>
    %cst_121 = arith.constant dense<0.000000e+00> : vector<1x128xf32>
    %135 = tpu.matmul %133, %134, %cst_121 {dimension_numbers = #tpu.dot_dimension_numbers<[1], [0], [0], [1], [0, 0, 1, 1], [], []>} : vector<1x576xbf16>, vector<576x128xbf16>, vector<1x128xf32> -> vector<1x128xf32>
    %c9 = arith.constant 9 : index
    %c0_122 = arith.constant 0 : index
    %136 = vector.load %arg9[%c9, %c0_122] : memref<12x128xf32, #tpu.memory_space<vmem>>, vector<3x128xf32>
    %137 = vector.extract_strided_slice %136 {offsets = [0, 0], sizes = [1, 128], strides = [1, 1]} : vector<3x128xf32> to vector<1x128xf32>
    %138 = arith.addf %135, %137 : vector<1x128xf32>
    %cst_123 = arith.constant 0.000000e+00 : f32
    %139 = vector.broadcast %cst_123 : f32 to vector<1x128xf32>
    %140 = arith.maximumf %138, %139 : vector<1x128xf32>
    %141 = vector.extract_strided_slice %136 {offsets = [1, 0], sizes = [1, 128], strides = [1, 1]} : vector<3x128xf32> to vector<1x128xf32>
    %142 = arith.mulf %140, %141 : vector<1x128xf32>
    %143 = vector.extract_strided_slice %136 {offsets = [2, 0], sizes = [1, 128], strides = [1, 1]} : vector<3x128xf32> to vector<1x128xf32>
    %144 = arith.addf %142, %143 : vector<1x128xf32>
    %cst_124 = arith.constant dense<0.000000e+00> : vector<128xf32>
    %145 = vector.multi_reduction <add>, %144, %cst_124 [0] : vector<1x128xf32> to vector<128xf32>
    %146 = vector.shape_cast %145 : vector<128xf32> to vector<1x128xf32>
    %cst_125 = arith.constant 1.000000e+00 : f32
    %147 = vector.broadcast %cst_125 : f32 to vector<1x128xf32>
    %148 = arith.divf %146, %147 : vector<1x128xf32>
    %149 = arith.truncf %148 : vector<1x128xf32> to vector<1x128xbf16>
    %c0_126 = arith.constant 0 : index
    %c0_127 = arith.constant 0 : index
    %150 = vector.load %arg10[%c0_126, %c0_127] : memref<128x10xbf16, #tpu.memory_space<vmem>>, vector<128x10xbf16>
    %cst_128 = arith.constant dense<0.000000e+00> : vector<1x10xf32>
    %151 = tpu.matmul %149, %150, %cst_128 {dimension_numbers = #tpu.dot_dimension_numbers<[1], [0], [0], [1], [0, 0, 1, 1], [], []>} : vector<1x128xbf16>, vector<128x10xbf16>, vector<1x10xf32> -> vector<1x10xf32>
    %c0_129 = arith.constant 0 : index
    %c0_130 = arith.constant 0 : index
    %152 = vector.load %arg11[%c0_129, %c0_130] : memref<1x10xf32, #tpu.memory_space<vmem>>, vector<1x10xf32>
    %153 = arith.addf %151, %152 : vector<1x10xf32>
    %cst_131 = arith.constant dense<0xFF800000> : vector<1xf32>
    %154 = vector.multi_reduction <maximumf>, %153, %cst_131 [1] : vector<1x10xf32> to vector<1xf32>
    %155 = vector.shape_cast %154 : vector<1xf32> to vector<1x1xf32>
    %156 = vector.broadcast %155 : vector<1x1xf32> to vector<1x10xf32>
    %157 = arith.subf %153, %156 : vector<1x10xf32>
    %158 = math.exp %157 : vector<1x10xf32>
    %cst_132 = arith.constant dense<0.000000e+00> : vector<1xf32>
    %159 = vector.multi_reduction <add>, %158, %cst_132 [1] : vector<1x10xf32> to vector<1xf32>
    %160 = vector.shape_cast %159 : vector<1xf32> to vector<1x1xf32>
    %161 = vector.broadcast %160 : vector<1x1xf32> to vector<1x10xf32>
    %162 = arith.divf %158, %161 : vector<1x10xf32>
    %c0_133 = arith.constant 0 : index
    %c0_134 = arith.constant 0 : index
    %c0_135 = arith.constant 0 : index
    %163 = vector.load %arg12[%c0_133, %c0_134, %c0_135] : memref<1x1x10xf32, #tpu.memory_space<vmem>>, vector<1x1x10xf32>
    %164 = vector.shape_cast %163 : vector<1x1x10xf32> to vector<1x10xf32>
    %165 = vector.shape_cast %162 : vector<1x10xf32> to vector<1x1x10xf32>
    tpu.vector_store %arg12[%c0_133, %c0_134, %c0_135], %165 {strides = array<i32>} : memref<1x1x10xf32, #tpu.memory_space<vmem>>, vector<1x1x10xf32>,
    return
  }
  func.func @transform_0(%arg0: i32) -> (i32, i32, i32) {
    %c0_i32 = arith.constant 0 : i32
    %c0_i32_0 = arith.constant 0 : i32
    %c0_i32_1 = arith.constant 0 : i32
    return %arg0, %c0_i32, %c0_i32_0 : i32, i32, i32
  }
  func.func @transform_1(%arg0: i32) -> (i32, i32, i32) {
    %c0_i32 = arith.constant 0 : i32
    %c0_i32_0 = arith.constant 0 : i32
    %c0_i32_1 = arith.constant 0 : i32
    %c0_i32_2 = arith.constant 0 : i32
    return %c0_i32, %c0_i32_0, %c0_i32_1 : i32, i32, i32
  }
  func.func @transform_2(%arg0: i32) -> (i32, i32, i32) {
    %c0_i32 = arith.constant 0 : i32
    %c0_i32_0 = arith.constant 0 : i32
    %c0_i32_1 = arith.constant 0 : i32
    %c0_i32_2 = arith.constant 0 : i32
    return %c0_i32, %c0_i32_0, %c0_i32_1 : i32, i32, i32
  }
  func.func @transform_3(%arg0: i32) -> (i32, i32, i32) {
    %c0_i32 = arith.constant 0 : i32
    %c0_i32_0 = arith.constant 0 : i32
    %c0_i32_1 = arith.constant 0 : i32
    %c0_i32_2 = arith.constant 0 : i32
    return %c0_i32, %c0_i32_0, %c0_i32_1 : i32, i32, i32
  }
  func.func @transform_4(%arg0: i32) -> (i32, i32) {
    %c0_i32 = arith.constant 0 : i32
    %c0_i32_0 = arith.constant 0 : i32
    %c0_i32_1 = arith.constant 0 : i32
    return %c0_i32, %c0_i32_0 : i32, i32
  }
  func.func @transform_5(%arg0: i32) -> (i32, i32) {
    %c0_i32 = arith.constant 0 : i32
    %c0_i32_0 = arith.constant 0 : i32
    %c0_i32_1 = arith.constant 0 : i32
    return %c0_i32, %c0_i32_0 : i32, i32
  }
  func.func @transform_6(%arg0: i32) -> (i32, i32) {
    %c0_i32 = arith.constant 0 : i32
    %c0_i32_0 = arith.constant 0 : i32
    %c0_i32_1 = arith.constant 0 : i32
    return %c0_i32, %c0_i32_0 : i32, i32
  }
  func.func @transform_7(%arg0: i32) -> (i32, i32) {
    %c0_i32 = arith.constant 0 : i32
    %c0_i32_0 = arith.constant 0 : i32
    %c0_i32_1 = arith.constant 0 : i32
    return %c0_i32, %c0_i32_0 : i32, i32
  }
  func.func @transform_8(%arg0: i32) -> (i32, i32) {
    %c0_i32 = arith.constant 0 : i32
    %c0_i32_0 = arith.constant 0 : i32
    %c0_i32_1 = arith.constant 0 : i32
    return %c0_i32, %c0_i32_0 : i32, i32
  }
  func.func @transform_9(%arg0: i32) -> (i32, i32) {
    %c0_i32 = arith.constant 0 : i32
    %c0_i32_0 = arith.constant 0 : i32
    %c0_i32_1 = arith.constant 0 : i32
    return %c0_i32, %c0_i32_0 : i32, i32
  }
  func.func @transform_10(%arg0: i32) -> (i32, i32) {
    %c0_i32 = arith.constant 0 : i32
    %c0_i32_0 = arith.constant 0 : i32
    %c0_i32_1 = arith.constant 0 : i32
    return %c0_i32, %c0_i32_0 : i32, i32
  }
  func.func @transform_11(%arg0: i32) -> (i32, i32, i32) {
    %c0_i32 = arith.constant 0 : i32
    %c0_i32_0 = arith.constant 0 : i32
    %c0_i32_1 = arith.constant 0 : i32
    return %arg0, %c0_i32, %c0_i32_0 : i32, i32, i32
  }
}

</mosaic_0001>

<bundles_post_ra>
// kernel: audio_classifier_forward.1
= control target key start
LH: loop header
LB: loop body
LE: loop exit
PB: predicated region body
PF: predicated region fallthrough
CT: control target
= control target key end

     0   :  { %s4546_s0 = inlined_call_operand.vmem [shape: bf16[2,64,18], index: 0, kind: input, shape index: {}]   ;;  %s4547_s1 = inlined_call_operand.vmem [shape: bf16[9,16,64], index: 1, kind: input, shape index: {}]   ;;  %s4548_s2 = inlined_call_operand.vmem [shape: bf16[9,4,16], index: 2, kind: input, shape index: {}]   ;;  %s4549_s3 = inlined_call_operand.vmem [shape: bf16[9,1,4], index: 3, kind: input, shape index: {}]   ;;  %s4550_s4 = inlined_call_operand.vmem [shape: bf16[18,16], index: 4, kind: input, shape index: {}]   ;;  %s4551_s5 = inlined_call_operand.vmem [shape: bf16[144,32], index: 5, kind: input, shape index: {}]   ;;  %s4552_s6 = inlined_call_operand.vmem [shape: bf16[288,64], index: 6, kind: input, shape index: {}]   ;;  %s4553_s7 = inlined_call_operand.vmem [shape: bf16[576,128], index: 7, kind: input, shape index: {}]   ;;  %s4554_s8 = inlined_call_operand.vmem [shape: f32[12,128], index: 8, kind: input, shape index: {}]   ;;  %s4555_s9 = inlined_call_operand.vmem [shape: bf16[128,10], index: 9, kind: input, shape index: {}]   ;;  %s4556_s10 = inlined_call_operand.vmem [shape: f32[1,10], index: 10, kind: input, shape index: {}]   ;;  %s4557_s11 = inlined_call_operand.hbm [shape: f32[2,1,10], index: 11, kind: output, shape index: {}]  }
   0x1   :  { %4562 = sst [smem:[#allocation5_spill]] %s4546_s0 }
   0x2   :  { %4563 = sst [smem:[#allocation6_spill]] %s4547_s1 }
   0x3   :  { %16 = vsyncpa [#allocation3], 0 }
   0x4   :  { %18 = vsyncpa [#allocation3 + $0x1], 0  ;;  %s3886_s17 = smov 0   ;;  %s3888_s18 = smov 0  }
   0x5   :  { %s3890_s19 = smov 0   ;;  %s3892_s20 = smov 0  }
   0x6 LB: > { %s3907_s21 = sadd.s32 4294967295, %s3813_s20   ;;  %s2953_s22 = sadd.s32 4294967294, %s3813_s20   ;;  %s3813_s20 = sphi %s3892_s20, %s4574_s20   ;;  %s3809_s19 = sphi %s3890_s19, %s4573_s19   ;;  %s3805_s18 = sphi %s3888_s18, %s4572_s18   ;;  %s3801_s17 = sphi %s3886_s17, %s4571_s17  }
   0x7   : > { %s3911_s23 = sadd.s32 1, %s3813_s20   ;;  %s267_s24 = sadd.s32 1, %s3809_s19 }
   0x8   : > { %s264_s25 = ssub.s32 %s3813_s20, %s3911_s23  ;;  %p277_p0 = scmp.ne.s32.totalorder %s3809_s19, %s3805_s18 }
   0x9   : > { %p265_p1 = scmp.eq.s32.totalorder %s264_s25, 0  ;;  %p278_p2 = scmp.eq.s32.totalorder %s3907_s21, 1 }
   0xa   : > { %p283_p3 = scmp.ne.s32.totalorder %s3805_s18, %s3801_s17  ;;  %p284_p4 = scmp.eq.s32.totalorder %s2953_s22, 1 }
   0xb   : > { %s3922_s26 = scalar_select %p265_p1, %s3809_s19, %s267_s24  }
   0xc   : > { %p3924_p5 = por %p278_p2, %p277_p0  ;;  %p3928_p6 = por %p284_p4, %p283_p3 }
   0xd   : > { %p2956_p7 = scmp.ge.s32.totalorder %s3813_s20, 1  ;;  %p340_p8 = scmp.lt.s32.totalorder %s3813_s20, 3 }
   0xf   : > { %p341_p9 = pnand %p2956_p7, %p340_p8 }
  0x10   : > { %p379_p10 = scmp.lt.s32.totalorder (!%p341_p9), %s3907_s21, 1  ;;  %s4566_s0 = sld [smem:[#allocation5_spill]] (!%p341_p9) }
  0x11   : > { %344 = sbr.rel (%p341_p9) target bundleno = 2471 (0x9a7), region = 64  ;;  %s4567_s1 = sld [smem:[#allocation6_spill]] (!%p341_p9) }
  0x12   : > { %s3817_s25 = smov (!%p341_p9), 16   ;;  %s4559_s29 = smov (!%p341_p9), 64  }
  0x13   : > { %s3823_s13 = smov (!%p341_p9), 112   ;;  %s4570_s30 = smov (!%p341_p9), 64  }
  0x14   : > { %s3825_s22 = smov (!%p341_p9), [#allocation2]  }
  0x16   : > { %v3663_v0 = vld [vmem:[%s4550_s4 + $0x8] ss:$0 sps:$4 sm:$0x11]   ;;  %vm443_vm0 = vcmask 1040384   ;;  %v3664_v1 = vld [vmem:[%s4550_s4] sm:$0xff]   ;;  %s380_s14 = scalar_select %p379_p10, %s3907_s21, 1  ;;  %v397_v8 = vlaneseq }
  0x17   : > { %3553 = vmatprep.subr.msk.bf16.mxu1 %vm443_vm0, %v3663_v0  ;;  %v445_v2 = vsel %vm443_vm0, %v3663_v0, 0  ;;  %vm430_vm1 = vcmask 146432   ;;  %v3815_v7 = vmov 0.0   ;;  %vm3816_vm2 = vmmov 0   ;;  %v396_v13 = vld [vmem:[%s4554_s8] sm:$0x7] }
  0x18   : > { %3286 = vmatpush3.bf16.msra.mxu1 %v445_v2  ;;  %s3114_s15 = sshll.u32 %s380_s14, 5  ;;  %3309 = vmatprep.subr.bf16.mxu0 %v3815_v7  ;;  %v398_v9 = vshrl.u32 %v397_v8, 7  ;;  %v3669_v61 = vld [vmem:[%s4567_s1] sm:$0xff]   ;;  %v3670_v62 = vld [vmem:[%s4567_s1 + $0x8] sm:$0xff]   ;;  %vm555_vm3 = vcmask 523264   ;;  %v3671_v63 = vld [vmem:[%s4567_s1 + $0x10] sm:$0xff]  }
  0x19   : > { %3287 = vmatprep.subr.bf16.mxu1 %v3664_v1  ;;  %s383_s24 = scalar_lea.vmem %s4566_s0, %s3114_s15  ;;  %3317 = vmatprep.mubr.msk.bf16.mxu0 %vm3816_vm2, %v3815_v7  ;;  %v3672_v0 = vld [vmem:[%s4567_s1 + $0x18] sm:$0xff]   ;;  %v3674_v2 = vld [vmem:[%s4567_s1 + $0x28] sm:$0xff]   ;;  %s4558_s14 = smov 96   ;;  %vm1072_vm4 = vcmask 130048   ;;  %vm1075_vm5 = vcmask 261120   ;;  %vm1078_vm6 = vcmask 392192  }
  0x1a   : > { %v3665_v3 = vld [vmem:[%s383_s24] sm:$0xff]   ;;  %v3666_v4 = vld [vmem:[%s383_s24 + $0x8] sm:$0xff]   ;;  %v3667_v5 = vld [vmem:[%s383_s24 + $0x10] sm:$0xff]   ;;  %v3951_v12 = vsub.s32 0, %v398_v9  ;;  %v3957_v19 = vsub.s32 1, %v398_v9  ;;  %v3960_v25 = vsub.s32 2, %v398_v9 }
  0x1b   : > { %3289 = vmatprep.mubr.msk.bf16.mxu1 %vm430_vm1, %v3665_v3  ;;  %v3668_v6 = vld [vmem:[%s383_s24 + $0x18] sm:$0xff]   ;;  %v3675_v3 = vld [vmem:[%s4567_s1 + $0x30] sm:$0xff]   ;;  %s3819_s24 = smov 48   ;;  %vm1083_vm7 = vcmask 654336   ;;  %vm1086_vm8 = vcmask 785408   ;;  %vm1089_vm9 = vcmask 916480  }
  0x1c   : > { %3288 = vmatpush3.bf16.msra.mxu1 %v3664_v1  ;;  %v400_v16 = vrot.slane %v396_v13, %v3951_v12  ;;  %v523_v24 = vrot.slane %v396_v13, %v3957_v19  ;;  %v535_v35 = vrot.slane %v396_v13, %v3960_v25  ;;  %v3673_v1 = vld [vmem:[%s4567_s1 + $0x20] sm:$0xff]   ;;  %vm1916_vm10 = vcmask 1041408   ;;  %s3757_s0 = sshll.u32 %s3825_s22, 4  ;;  %s3758_s0 = int_to_ptr.vmem [resolvable:$false] %s3757_s0 }
  0x1d   : > { %3297 = vmatprep.subr.bf16.mxu1 %v3815_v7  ;;  %vm1912_vm11 = vcmask 31744   ;;  %vm2872_vm12 = vcmask 73728  }
  0x1f   : > { %3290 = vmatmul.mubr.msk.bf16.vlgmr.msra.gmra.mxu1 %vm430_vm1, %v3666_v4  ;;  %v3676_v4 = vld [vmem:[%s4567_s1 + $0x38] sm:$0xff]  }
  0x20   : > { %3293 = vmatprep.mubr.msk.bf16.mxu1 %vm430_vm1, %v3667_v5  ;;  %v3677_v5 = vld [vmem:[%s4567_s1 + $0x40] sm:$0xff]  }
  0x27   : > { %3294 = vmatmul.mubr.msk.bf16.gmra.mxu1 %vm430_vm1, %v3668_v6 }
  0x28   : > { %3305 = vmatprep.mubr.msk.bf16.mxu1 %vm3816_vm2, %v3815_v7 }
  0xdf   : > { %v3291_v10 = vpop.f32.mrf.mxu1 }
  0xe0   : > { %v490_v29 = vadd.f32 %v3291_v10, %v400_v16 }
  0xe1   : > { %v481_v11 = vpop.f32.mrf.mxu1 }
  0xe2   : > { %v514_v39 = vmax.f32 %v490_v29, 0.0  ;;  %v482_v41 = vadd.f32 %v481_v11, %v400_v16 }
  0xe3   : > { %v3292_v14 = vpop.f32.mrf.mxu1 }
  0xe4   : > { %v493_v26 = vadd.f32 %v3292_v14, %v400_v16  ;;  %v526_v49 = vmul.f32 %v523_v24, %v514_v39  ;;  %v512_v50 = vmax.f32 %v482_v41, 0.0 }
  0xe5   : > { %v484_v15 = vpop.f32.mrf.mxu1 }
  0xe6   : > { %v515_v36 = vmax.f32 %v493_v26, 0.0  ;;  %v485_v37 = vadd.f32 %v484_v15, %v400_v16  ;;  %v538_v55 = vadd.f32 %v535_v35, %v526_v49  ;;  %v524_v56 = vmul.f32 %v523_v24, %v512_v50 }
  0xe7   : > { %v3295_v17 = vpop.f32.mrf.mxu1 }
  0xe8   : > { %v506_v18 = vadd.f32 %v3295_v17, %v400_v16  ;;  %v527_v45 = vmul.f32 %v523_v24, %v515_v36  ;;  %v513_v46 = vmax.f32 %v485_v37, 0.0  ;;  %v536_v59 = vadd.f32 %v535_v35, %v524_v56  ;;  %v3678_v17 = vld [vmem:[%s4551_s5 + $0x38] sm:$0xff]  }
  0xe9   : > { %v497_v20 = vpop.f32.mrf.mxu1 }
  0xea   : > { %v518_v21 = vmax.f32 %v506_v18, 0.0  ;;  %v498_v22 = vadd.f32 %v497_v20, %v400_v16  ;;  %v539_v52 = vadd.f32 %v535_v35, %v527_v45  ;;  %v525_v53 = vmul.f32 %v523_v24, %v513_v46  ;;  %v3679_v20 = vld [vmem:[%s4551_s5 + $0x30] sm:$0xff]   ;;  %v3685_v45 = vld [vmem:[%s4551_s5] sm:$0xff]  }
  0xeb   : > { %v3296_v23 = vpop.f32.mrf.mxu1  ;;  %v3818_v18 = vmov 0  }
  0xec   : > { %v509_v27 = vadd.f32 %v3296_v23, %v400_v16  ;;  %v530_v31 = vmul.f32 %v523_v24, %v518_v21  ;;  %v516_v32 = vmax.f32 %v498_v22, 0.0  ;;  %v3975_v57 = vpack.c.bf16 %v539_v52, %v538_v55  ;;  %v3680_v23 = vld [vmem:[%s4551_s5 + $0x28] sm:$0xff]  }
  0xed   : > { %v500_v28 = vpop.f32.mrf.mxu1  ;;  %v537_v58 = vadd.f32 %v535_v35, %v525_v53 }
  0xee   : > { %v501_v30 = vadd.f32 %v500_v28, %v400_v16  ;;  %v519_v33 = vmax.f32 %v509_v27, 0.0  ;;  %v542_v42 = vadd.f32 %v535_v35, %v530_v31  ;;  %v528_v43 = vmul.f32 %v523_v24, %v516_v32  ;;  %v3681_v31 = vld [vmem:[%s4551_s5 + $0x20] sm:$0xff]  }
  0xef   : > { %v3981_v60 = vpack.c.bf16 %v537_v58, %v536_v59 }
  0xf0   : > { %v517_v34 = vmax.f32 %v501_v30, 0.0  ;;  %v531_v38 = vmul.f32 %v523_v24, %v519_v33  ;;  %v540_v51 = vadd.f32 %v535_v35, %v528_v43 }
  0xf2   : > { %v529_v40 = vmul.f32 %v523_v24, %v517_v34  ;;  %v543_v44 = vadd.f32 %v535_v35, %v531_v38  ;;  %v3682_v34 = vld [vmem:[%s4551_s5 + $0x18] sm:$0xff]   ;;  %v3684_v38 = vld [vmem:[%s4551_s5 + $0x8] sm:$0xff]  }
  0xf4   : > { %v3963_v47 = vpack.c.bf16 %v543_v44, %v542_v42  ;;  %v541_v48 = vadd.f32 %v535_v35, %v529_v40  ;;  %v3683_v35 = vld [vmem:[%s4551_s5 + $0x10] sm:$0xff]  }
  0xf6   : > { %3298 = vmatpush3.bf16.msra.mxu1 %v3963_v47  ;;  %3310 = vmatpush3.bf16.msra.mxu0 %v3963_v47  ;;  %v3969_v54 = vpack.c.bf16 %v541_v48, %v540_v51  ;;  %v3686_v48 = vld [vmem:[%s4551_s5 + $0x40] sm:$0xff]  }
  0xf7   : > { %3299 = vmatprep.subr.bf16.mxu1 %v3815_v7  ;;  %3311 = vmatprep.subr.bf16.mxu0 %v3815_v7 }
  0xfa   : > { %3300 = vmatpush3.bf16.msra.mxu1 %v3969_v54  ;;  %3312 = vmatpush3.bf16.msra.mxu0 %v3969_v54 }
  0xfb   : > { %3301 = vmatprep.subr.bf16.mxu1 %v3815_v7  ;;  %3313 = vmatprep.subr.bf16.mxu0 %v3815_v7 }
  0xfe   : > { %3302 = vmatpush3.bf16.msra.mxu1 %v3975_v57  ;;  %3314 = vmatpush3.bf16.msra.mxu0 %v3975_v57 }
  0xff   : > { %3303 = vmatprep.subr.bf16.mxu1 %v3815_v7  ;;  %3315 = vmatprep.subr.bf16.mxu0 %v3815_v7 }
 0x102   : > { %3304 = vmatpush3.bf16.msra.mxu1 %v3981_v60  ;;  %3316 = vmatpush3.bf16.msra.mxu0 %v3981_v60 }
 0x103   : > { %3321 = vmatprep.subr.bf16.mxu1 %v3815_v7  ;;  %3333 = vmatprep.subr.bf16.mxu0 %v3815_v7 }
 0x105   : > { %3306 = vmatmul.mubr.msk.bf16.vlgmr.msra.gmra.mxu1 %vm555_vm3, %v3669_v61  ;;  %3318 = vmatmul.mubr.msk.bf16.vlgmr.msra.gmra.mxu0 %vm555_vm3, %v3670_v62 }
 0x106   : > { %3322 = vmatpush3.bf16.msra.mxu1 %v3963_v47  ;;  %3334 = vmatpush3.bf16.msra.mxu0 %v3963_v47 }
 0x107   : > { %3323 = vmatprep.subr.bf16.mxu1 %v3815_v7  ;;  %3335 = vmatprep.subr.bf16.mxu0 %v3815_v7 }
 0x108   : > { %3329 = vmatprep.mubr.msk.bf16.mxu1 %vm3816_vm2, %v3815_v7  ;;  %3341 = vmatprep.mubr.msk.bf16.mxu0 %vm3816_vm2, %v3815_v7 }
 0x10a   : > { %3324 = vmatpush3.bf16.msra.mxu1 %v3969_v54  ;;  %3336 = vmatpush3.bf16.msra.mxu0 %v3969_v54 }
 0x10b   : > { %3325 = vmatprep.subr.bf16.mxu1 %v3815_v7  ;;  %3337 = vmatprep.subr.bf16.mxu0 %v3815_v7 }
 0x10e   : > { %3326 = vmatpush3.bf16.msra.mxu1 %v3975_v57  ;;  %3338 = vmatpush3.bf16.msra.mxu0 %v3975_v57 }
 0x10f   : > { %3327 = vmatprep.subr.bf16.mxu1 %v3815_v7  ;;  %3339 = vmatprep.subr.bf16.mxu0 %v3815_v7 }
 0x112   : > { %3328 = vmatpush3.bf16.msra.mxu1 %v3981_v60  ;;  %3340 = vmatpush3.bf16.msra.mxu0 %v3981_v60 }
 0x113   : > { %3345 = vmatprep.subr.bf16.mxu1 %v3815_v7  ;;  %3357 = vmatprep.subr.bf16.mxu0 %v3815_v7 }
 0x115   : > { %3330 = vmatmul.mubr.msk.bf16.vlgmr.msra.gmra.mxu1 %vm555_vm3, %v3671_v63  ;;  %3342 = vmatmul.mubr.msk.bf16.vlgmr.msra.gmra.mxu0 %vm555_vm3, %v3672_v0 }
 0x116   : > { %3346 = vmatpush3.bf16.msra.mxu1 %v3963_v47  ;;  %3358 = vmatpush3.bf16.msra.mxu0 %v3963_v47 }
 0x117   : > { %3347 = vmatprep.subr.bf16.mxu1 %v3815_v7  ;;  %3359 = vmatprep.subr.bf16.mxu0 %v3815_v7 }
 0x118   : > { %3353 = vmatprep.mubr.msk.bf16.mxu1 %vm3816_vm2, %v3815_v7  ;;  %3365 = vmatprep.mubr.msk.bf16.mxu0 %vm3816_vm2, %v3815_v7 }
 0x11a   : > { %3348 = vmatpush3.bf16.msra.mxu1 %v3969_v54  ;;  %3360 = vmatpush3.bf16.msra.mxu0 %v3969_v54 }
 0x11b   : > { %3349 = vmatprep.subr.bf16.mxu1 %v3815_v7  ;;  %3361 = vmatprep.subr.bf16.mxu0 %v3815_v7 }
 0x11e   : > { %3350 = vmatpush3.bf16.msra.mxu1 %v3975_v57  ;;  %3362 = vmatpush3.bf16.msra.mxu0 %v3975_v57 }
 0x11f   : > { %3351 = vmatprep.subr.bf16.mxu1 %v3815_v7  ;;  %3363 = vmatprep.subr.bf16.mxu0 %v3815_v7 }
 0x122   : > { %3352 = vmatpush3.bf16.msra.mxu1 %v3981_v60  ;;  %3364 = vmatpush3.bf16.msra.mxu0 %v3981_v60 }
 0x123   : > { %3369 = vmatprep.subr.bf16.mxu1 %v3815_v7  ;;  %3381 = vmatprep.subr.bf16.mxu0 %v3815_v7 }
 0x125   : > { %3354 = vmatmul.mubr.msk.bf16.vlgmr.msra.gmra.mxu1 %vm555_vm3, %v3673_v1  ;;  %3366 = vmatmul.mubr.msk.bf16.vlgmr.msra.gmra.mxu0 %vm555_vm3, %v3674_v2 }
 0x126   : > { %3370 = vmatpush3.bf16.msra.mxu1 %v3963_v47  ;;  %3382 = vmatpush3.bf16.msra.mxu0 %v3963_v47 }
 0x127   : > { %3371 = vmatprep.subr.bf16.mxu1 %v3815_v7  ;;  %3383 = vmatprep.subr.bf16.mxu0 %v3815_v7 }
 0x128   : > { %3377 = vmatprep.mubr.msk.bf16.mxu1 %vm3816_vm2, %v3815_v7  ;;  %3389 = vmatprep.mubr.msk.bf16.mxu0 %vm3816_vm2, %v3815_v7 }
 0x12a   : > { %3372 = vmatpush3.bf16.msra.mxu1 %v3969_v54  ;;  %3384 = vmatpush3.bf16.msra.mxu0 %v3969_v54 }
 0x12b   : > { %3373 = vmatprep.subr.bf16.mxu1 %v3815_v7  ;;  %3385 = vmatprep.subr.bf16.mxu0 %v3815_v7 }
 0x12e   : > { %3374 = vmatpush3.bf16.msra.mxu1 %v3975_v57  ;;  %3386 = vmatpush3.bf16.msra.mxu0 %v3975_v57 }
 0x12f   : > { %3375 = vmatprep.subr.bf16.mxu1 %v3815_v7  ;;  %3387 = vmatprep.subr.bf16.mxu0 %v3815_v7 }
 0x132   : > { %3376 = vmatpush3.bf16.msra.mxu1 %v3981_v60  ;;  %3388 = vmatpush3.bf16.msra.mxu0 %v3981_v60 }
 0x133   : > { %3393 = vmatprep.subr.bf16.mxu1 %v3815_v7  ;;  %1174 = vmatprep.subr.bf16.mxu0 %v3818_v18 }
 0x135   : > { %3378 = vmatmul.mubr.msk.bf16.vlgmr.msra.gmra.mxu1 %vm555_vm3, %v3675_v3  ;;  %3390 = vmatmul.mubr.msk.bf16.vlgmr.msra.gmra.mxu0 %vm555_vm3, %v3676_v4 }
 0x136   : > { %3394 = vmatpush3.bf16.msra.mxu1 %v3963_v47  ;;  %3401 = vmatprep.mubr.msk.bf16.mxu1 %vm3816_vm2, %v3815_v7 }
 0x137   : > { %3395 = vmatprep.subr.bf16.mxu1 %v3815_v7  ;;  %1175 = vmatpush1.bf16.msra.mxu0 %v3678_v17 }
 0x138   : > { %1176 = vmatprep.subr.bf16.mxu0 %v3818_v18 }
 0x13a   : > { %3396 = vmatpush3.bf16.msra.mxu1 %v3969_v54 }
 0x13b   : > { %3397 = vmatprep.subr.bf16.mxu1 %v3815_v7  ;;  %1177 = vmatpush1.bf16.msra.mxu0 %v3679_v20 }
 0x13c   : > { %1178 = vmatprep.subr.bf16.mxu0 %v3818_v18 }
 0x13e   : > { %3398 = vmatpush3.bf16.msra.mxu1 %v3975_v57 }
 0x13f   : > { %3399 = vmatprep.subr.bf16.mxu1 %v3815_v7  ;;  %1179 = vmatpush1.bf16.msra.mxu0 %v3680_v23 }
 0x140   : > { %1180 = vmatprep.subr.bf16.mxu0 %v3818_v18 }
 0x142   : > { %3400 = vmatpush3.bf16.msra.mxu1 %v3981_v60 }
 0x143   : > { %3405 = vmatprep.subr.bf16.mxu1 %v3815_v7  ;;  %1181 = vmatpush1.bf16.msra.mxu0 %v3681_v31 }
 0x144   : > { %1182 = vmatprep.subr.bf16.mxu0 %v3818_v18 }
 0x145   : > { %3402 = vmatmul.mubr.msk.bf16.vlgmr.msra.gmra.mxu1 %vm555_vm3, %v3677_v5 }
 0x146   : > { %3407 = vmatprep.mubr.msk.bf16.mxu1 %vm3816_vm2, %v3815_v7 }
 0x147   : > { %1183 = vmatpush1.bf16.msra.mxu0 %v3682_v34 }
 0x148   : > { %1184 = vmatprep.subr.bf16.mxu0 %v3818_v18 }
 0x14b   : > { %1185 = vmatpush1.bf16.msra.mxu0 %v3683_v35 }
 0x14c   : > { %1186 = vmatprep.subr.bf16.mxu0 %v3818_v18 }
 0x14f   : > { %1187 = vmatpush1.bf16.msra.mxu0 %v3684_v38 }
 0x150   : > { %1188 = vmatprep.subr.bf16.mxu0 %v3818_v18 }
 0x153   : > { %1189 = vmatpush1.bf16.msra.mxu0 %v3685_v45 }
 0x154   : > { %1204 = vmatprep.subr.bf16.mxu0 %v3818_v18 }
 0x157   : > { %1205 = vmatpush2.bf16.msra.mxu0 %v3686_v48 }
 0x158   : > { %3429 = vmatprep.subr.bf16.mxu0 %v3815_v7 }
 0x1c5   : > { %v4094_v6 = vpop.f32.mrf.mxu1  ;;  %v645_v8 = vpop.f32.mrf.mxu0 }
 0x1c7   : > { %v3307_v9 = vpop.f32.mrf.mxu1  ;;  %v3319_v10 = vpop.f32.mrf.mxu0 }
 0x1c9   : > { %v4096_v11 = vpop.f32.mrf.mxu1  ;;  %v648_v13 = vpop.f32.mrf.mxu0 }
 0x1ca   : > { %v3603_v14 = vpack.i.bf16 %v648_v13, %v645_v8 }
 0x1cb   : > { %v3308_v15 = vpop.f32.mrf.mxu1  ;;  %v3320_v16 = vpop.f32.mrf.mxu0 }
 0x1cc   : > { %3604 = vrot.lane.b32.xlu0 %v3603_v14, %s3817_s25  ;;  %s4561_s25 = smov 32  }
 0x1d5   : > { %v697_v21 = vpop.f32.mrf.mxu1  ;;  %v749_v22 = vpop.f32.mrf.mxu0 }
 0x1d7   : > { %v3331_v24 = vpop.f32.mrf.mxu1  ;;  %v3343_v26 = vpop.f32.mrf.mxu0 }
 0x1d9   : > { %v700_v27 = vpop.f32.mrf.mxu1  ;;  %v752_v28 = vpop.f32.mrf.mxu0 }
 0x1da   : > { %v3608_v29 = vpack.i.bf16 %v700_v27, %v697_v21  ;;  %v3613_v30 = vpack.i.bf16 %v752_v28, %v749_v22 }
 0x1db   : > { %v3332_v32 = vpop.f32.mrf.mxu1  ;;  %v3344_v33 = vpop.f32.mrf.mxu0 }
 0x1dc   : > { %3614 = vrot.lane.b32.xlu1 %v3613_v30, %s3819_s24  ;;  %3609 = vrot.lane.b32.xlu0 %v3608_v29, %s4561_s25  ;;  %s3821_s24 = smov 80   ;;  %s4568_s25 = smov 32  }
 0x1e5   : > { %v801_v36 = vpop.f32.mrf.mxu1  ;;  %v853_v37 = vpop.f32.mrf.mxu0 }
 0x1e7   : > { %v3355_v39 = vpop.f32.mrf.mxu1  ;;  %v3367_v40 = vpop.f32.mrf.mxu0 }
 0x1e8   : > { %v1112_v40 = vld [vmem:[%s4554_s8 + $0x3] sm:$0x7] }
 0x1e9   : > { %v804_v41 = vpop.f32.mrf.mxu1  ;;  %v856_v42 = vpop.f32.mrf.mxu0 }
 0x1ea   : > { %v3618_v43 = vpack.i.bf16 %v804_v41, %v801_v36  ;;  %v3623_v44 = vpack.i.bf16 %v856_v42, %v853_v37  ;;  %v1116_v41 = vrot.slane %v1112_v40, %v3951_v12 }
 0x1eb   : > { %v3356_v46 = vpop.f32.mrf.mxu1  ;;  %v3368_v47 = vpop.f32.mrf.mxu0 }
 0x1ec   : > { %3624 = vrot.lane.b32.xlu0 %v3623_v44, %s3821_s24  ;;  %3619 = vrot.lane.b32.xlu1 %v3618_v43, %s4559_s29  ;;  %v1220_v46 = vrot.slane %v1112_v40, %v3957_v19  ;;  %s377_s24 = sand.u32 1, %s3805_s18  }
 0x1ed   : > { %s378_s12 = scalar_lea.vmem [#allocation2], %s377_s24  ;;  %s2886_s15 = scalar_lea.sflag [#allocation3], %s377_s24 }
 0x1f5   : > { %v905_v49 = vpop.f32.mrf.mxu1  ;;  %v957_v50 = vpop.f32.mrf.mxu0 }
 0x1f7   : > { %v3379_v51 = vpop.f32.mrf.mxu1  ;;  %v3391_v52 = vpop.f32.mrf.mxu0 }
 0x1f8   : > { %v1226_v51 = vrot.slane %v1112_v40, %v3960_v25  ;;  %v3699_v40 = vld [vmem:[%s4552_s6 + $0x48] sm:$0xff]  }
 0x1f9   : > { %v908_v53 = vpop.f32.mrf.mxu1  ;;  %v960_v54 = vpop.f32.mrf.mxu0 }
 0x1fa   : > { %v3628_v55 = vpack.i.bf16 %v908_v53, %v905_v49  ;;  %v3633_v56 = vpack.i.bf16 %v960_v54, %v957_v50 }
 0x1fb   : > { %v3380_v57 = vpop.f32.mrf.mxu1  ;;  %v3392_v58 = vpop.f32.mrf.mxu0 }
 0x1fc   : > { %3634 = vrot.lane.b32.xlu0 %v3633_v56, %s3823_s13  ;;  %3629 = vrot.lane.b32.xlu1 %v3628_v55, %s4558_s14  ;;  %v1230_v57 = vld [vmem:[%s4548_s2] sm:$0x3]  ;;  %v3020_v58 = vld [vmem:[%s4548_s2 + $0x8] sm:$0x3]  ;;  %s2898_s14 = sshll.u32 %s378_s12, 4  ;;  %s2899_s14 = int_to_ptr.vmem [resolvable:$true] %s2898_s14 }
 0x1fd   : > { %s3753_s16 = scalar_lea.vmem %s2899_s14, 16  ;;  %p3760_p0 = scmp.lt.s32.totalorder %s2899_s14, %s3758_s0 }
 0x1fe   : > { %p3754_p11 = scmp.ne.s32.totalorder %s2899_s14, %s3753_s16 }
 0x200   : > { %p3755_p12 = pnand %p3754_p11, %p3924_p5 }
 0x202   : > { %p3756_p13 = pneg %p3755_p12 }
 0x205   : > { %v1009_v59 = vpop.f32.mrf.mxu1 }
 0x207   : > { %v3403_v60 = vpop.f32.mrf.mxu1 }
 0x208   : > { %v3024_v60 = vld [vmem:[%s4548_s2 + $0xc] sm:$0x3] }
 0x209   : > { %v1012_v61 = vpop.f32.mrf.mxu1 }
 0x20a   : > { %v1093_v62 = vpack.c.bf16 %v1012_v61, %v1009_v59  ;;  %v3014_v59 = vld [vmem:[%s4548_s2 + $0x2] sm:$0x3]  ;;  %v3016_v61 = vld [vmem:[%s4548_s2 + $0x4] sm:$0x3] }
 0x20b   : > { %v3404_v63 = vpop.f32.mrf.mxu1 }
 0x20c   : > { %3012 = vmatprep.mubr.msk.bf16.mxu0 %vm1072_vm4, %v1093_v62  ;;  %v3028_v62 = vld [vmem:[%s4548_s2 + $0x10] sm:$0x3]  ;;  %v3018_v63 = vld [vmem:[%s4548_s2 + $0x6] sm:$0x3] }
 0x23e   : > { %v3605_v0 = vpop.permute.xlu0 %3604 }
 0x23f   : > { %v3607_v3 = vunpack.i.h.bf16 %v3605_v0  ;;  %v3606_v4 = vunpack.i.l.bf16 %v3605_v0  ;;  %v3022_v0 = vld [vmem:[%s4548_s2 + $0xa] sm:$0x3] }
 0x241   : > { %v1073_v10 = vsel %vm1072_vm4, %v4094_v6, %v3606_v4  ;;  %v1074_v13 = vsel %vm1072_vm4, %v4096_v11, %v3607_v3  ;;  %v3688_v3 = vld [vmem:[%s4552_s6 + $0x38] sm:$0xff]  }
 0x24e   : > { %v3615_v1 = vpop.permute.xlu1 %3614  ;;  %v3610_v2 = vpop.permute.xlu0 %3609 }
 0x24f   : > { %v3612_v5 = vunpack.i.h.bf16 %v3610_v2  ;;  %v3611_v8 = vunpack.i.l.bf16 %v3610_v2  ;;  %v3617_v14 = vunpack.i.h.bf16 %v3615_v1  ;;  %v3616_v15 = vunpack.i.l.bf16 %v3615_v1  ;;  %v3026_v1 = vld [vmem:[%s4548_s2 + $0xe] sm:$0x3]  ;;  %v3687_v2 = vld [vmem:[%s4552_s6 + $0x78] sm:$0xff]  }
 0x251   : > { %v1077_v16 = vsel %vm1075_vm5, %v1074_v13, %v3612_v5  ;;  %v1076_v17 = vsel %vm1075_vm5, %v1073_v10, %v3611_v8 }
 0x252   : > { %v1079_v24 = vsel %vm1078_vm6, %v1076_v17, %v3616_v15  ;;  %v1080_v26 = vsel %vm1078_vm6, %v1077_v16, %v3617_v14  ;;  %v3689_v16 = vld [vmem:[%s4552_s6 + $0x70] sm:$0xff]  }
 0x253   : > { %v3690_v17 = vld [vmem:[%s4552_s6 + $0x30] sm:$0xff]  }
 0x25e   : > { %v3620_v9 = vpop.permute.xlu1 %3619  ;;  %v3625_v18 = vpop.permute.xlu0 %3624 }
 0x25f   : > { %v3622_v20 = vunpack.i.h.bf16 %v3620_v9  ;;  %v3621_v21 = vunpack.i.l.bf16 %v3620_v9  ;;  %v3627_v22 = vunpack.i.h.bf16 %v3625_v18  ;;  %v3626_v23 = vunpack.i.l.bf16 %v3625_v18  ;;  %v3691_v18 = vld [vmem:[%s4552_s6 + $0x68] sm:$0xff]  }
 0x261   : > { %v1082_v27 = vsel %vm555_vm3, %v1080_v26, %v3622_v20  ;;  %v1081_v6 = vsel %vm555_vm3, %v1079_v24, %v3621_v21  ;;  %v3693_v26 = vld [vmem:[%s4552_s6 + $0x60] sm:$0xff]  }
 0x262   : > { %v1084_v33 = vsel %vm1083_vm7, %v1081_v6, %v3626_v23  ;;  %v1085_v34 = vsel %vm1083_vm7, %v1082_v27, %v3627_v22  ;;  %v3692_v22 = vld [vmem:[%s4552_s6 + $0x28] sm:$0xff]  }
 0x26e   : > { %v3635_v28 = vpop.permute.xlu0 %3634  ;;  %v3630_v11 = vpop.permute.xlu1 %3629 }
 0x26f   : > { %v3637_v29 = vunpack.i.h.bf16 %v3635_v28  ;;  %v3636_v30 = vunpack.i.l.bf16 %v3635_v28  ;;  %v3632_v31 = vunpack.i.h.bf16 %v3630_v11  ;;  %v3631_v32 = vunpack.i.l.bf16 %v3630_v11  ;;  %v3694_v28 = vld [vmem:[%s4552_s6 + $0x20] sm:$0xff]  }
 0x271   : > { %v1088_v35 = vsel %vm1086_vm8, %v1085_v34, %v3632_v31  ;;  %v1087_v36 = vsel %vm1086_vm8, %v1084_v33, %v3631_v32  ;;  %v3696_v33 = vld [vmem:[%s4552_s6 + $0x18] sm:$0xff]  }
 0x272   : > { %v1090_v37 = vsel %vm1089_vm9, %v1087_v36, %v3636_v30  ;;  %v1091_v38 = vsel %vm1089_vm9, %v1088_v35, %v3637_v29  ;;  %v3695_v30 = vld [vmem:[%s4552_s6 + $0x58] sm:$0xff]  }
 0x273   : > { %v1092_v39 = vpack.c.bf16 %v1091_v38, %v1090_v37  ;;  %v3697_v37 = vld [vmem:[%s4552_s6 + $0x50] sm:$0xff]  }
 0x275   : > { %1207 = vmatmul.mubr.bf16.vlgmr.msra.gmra.mxu0 %v1092_v39  ;;  %v3698_v39 = vld [vmem:[%s4552_s6 + $0x10] sm:$0xff]  }
 0x276   : > { %3431 = vmatprep.mubr.msk.bf16.mxu0 %vm3816_vm2, %v3815_v7 }
 0x335   : > { %v1208_v42 = vpop.f32.mrf.mxu0 }
 0x336   : > { %v1209_v43 = vadd.f32 %v1208_v42, %v1116_v41 }
 0x337   : > { %v1210_v44 = vpop.f32.mrf.mxu0 }
 0x338   : > { %v1215_v45 = vmax.f32 %v1209_v43, 0.0  ;;  %v3700_v43 = vld [vmem:[%s4552_s6 + $0x8] sm:$0xff]  }
 0x339   : > { %v1211_v47 = vpop.f32.mrf.mxu0 }
 0x33a   : > { %v1212_v48 = vadd.f32 %v1211_v47, %v1116_v41  ;;  %v1221_v50 = vmul.f32 %v1220_v46, %v1215_v45  ;;  %v3701_v41 = vld [vmem:[%s4552_s6 + $0x88] sm:$0xff]  }
 0x33b   : > { %v1213_v49 = vpop.f32.mrf.mxu0 }
 0x33c   : > { %v1216_v52 = vmax.f32 %v1212_v48, 0.0  ;;  %v1227_v54 = vadd.f32 %v1226_v51, %v1221_v50  ;;  %v3703_v48 = vld [vmem:[%s4552_s6] sm:$0xff]  }
 0x33d   : > { %v3704_v49 = vld [vmem:[%s4552_s6 + $0x80] sm:$0xff]  }
 0x33e   : > { %v1222_v53 = vmul.f32 %v1220_v46, %v1216_v52  ;;  %v3702_v46 = vld [vmem:[%s4552_s6 + $0x40] sm:$0xff]  }
 0x340   : > { %v1228_v55 = vadd.f32 %v1226_v51, %v1222_v53 }
 0x342   : > { %v1229_v56 = vpack.c.bf16 %v1228_v55, %v1227_v54 }
 0x344   : > { %3406 = vmatpush3.bf16.msra.mxu1 %v1229_v56  ;;  %3430 = vmatpush3.bf16.msra.mxu0 %v1229_v56 }
 0x345   : > { %3411 = vmatprep.subr.bf16.mxu1 %v3815_v7  ;;  %3441 = vmatprep.subr.bf16.mxu0 %v3815_v7 }
 0x347   : > { %3408 = vmatmul.mubr.msk.bf16.vlgmr.msra.gmra.mxu1 %vm1072_vm4, %v1230_v57  ;;  %3432 = vmatmul.mubr.msk.bf16.vlgmr.msra.gmra.mxu0 %vm1072_vm4, %v3020_v58 }
 0x348   : > { %3412 = vmatpush3.bf16.msra.mxu1 %v1229_v56  ;;  %3442 = vmatpush3.bf16.msra.mxu0 %v1229_v56 }
 0x349   : > { %3413 = vmatprep.mubr.msk.bf16.mxu1 %vm3816_vm2, %v3815_v7  ;;  %3417 = vmatprep.subr.bf16.mxu1 %v3815_v7 }
 0x34a   : > { %3443 = vmatprep.mubr.msk.bf16.mxu0 %vm3816_vm2, %v3815_v7  ;;  %3453 = vmatprep.subr.bf16.mxu0 %v3815_v7 }
 0x34f   : > { %3414 = vmatmul.mubr.msk.bf16.vlgmr.msra.gmra.mxu1 %vm1072_vm4, %v3014_v59  ;;  %3444 = vmatmul.mubr.msk.bf16.vlgmr.msra.gmra.mxu0 %vm1072_vm4, %v3024_v60 }
 0x350   : > { %3418 = vmatpush3.bf16.msra.mxu1 %v1229_v56  ;;  %3454 = vmatpush3.bf16.msra.mxu0 %v1229_v56 }
 0x351   : > { %3419 = vmatprep.mubr.msk.bf16.mxu1 %vm3816_vm2, %v3815_v7  ;;  %3423 = vmatprep.subr.bf16.mxu1 %v3815_v7 }
 0x352   : > { %3455 = vmatprep.mubr.msk.bf16.mxu0 %vm3816_vm2, %v3815_v7  ;;  %3459 = vmatprep.subr.bf16.mxu0 %v3815_v7 }
 0x357   : > { %3420 = vmatmul.mubr.msk.bf16.vlgmr.msra.gmra.mxu1 %vm1072_vm4, %v3016_v61  ;;  %3456 = vmatmul.mubr.msk.bf16.vlgmr.msra.gmra.mxu0 %vm1072_vm4, %v3028_v62 }
 0x358   : > { %3424 = vmatpush3.bf16.msra.mxu1 %v1229_v56  ;;  %3425 = vmatprep.mubr.msk.bf16.mxu1 %vm3816_vm2, %v3815_v7 }
 0x359   : > { %3435 = vmatprep.subr.bf16.mxu1 %v3815_v7  ;;  %3463 = vmatprep.mubr.msk.bf16.mxu0 %vm3816_vm2, %v3815_v7 }
 0x35a   : > { %3460 = vmatpush3.bf16.msra.mxu0 %v3701_v41  ;;  %v3054_v41 = vld [vmem:[%s4549_s3 + $0x3] sm:$0x1] }
 0x35b   : > { %3461 = vmatprep.subr.bf16.mxu0 %v3815_v7 }
 0x35e   : > { %3462 = vmatpush3.bf16.msra.mxu0 %v3704_v49  ;;  %v3707_v49 = vld [vmem:[%s4553_s7 + $0x70] sm:$0xff]  }
 0x35f   : > { %3426 = vmatmul.mubr.msk.bf16.vlgmr.msra.gmra.mxu1 %vm1072_vm4, %v3018_v63  ;;  %3467 = vmatprep.subr.bf16.mxu0 %v3815_v7 }
 0x360   : > { %3436 = vmatpush3.bf16.msra.mxu1 %v1229_v56  ;;  %3437 = vmatprep.mubr.msk.bf16.mxu1 %vm3816_vm2, %v3815_v7 }
 0x361   : > { %3447 = vmatprep.subr.bf16.mxu1 %v3815_v7 }
 0x367   : > { %3438 = vmatmul.mubr.msk.bf16.vlgmr.msra.gmra.mxu1 %vm1072_vm4, %v3022_v0 }
 0x368   : > { %3448 = vmatpush3.bf16.msra.mxu1 %v1229_v56  ;;  %3449 = vmatprep.mubr.msk.bf16.mxu1 %vm3816_vm2, %v3815_v7 }
 0x369   : > { %3184 = vmatprep.subr.bf16.mxu1 %v3687_v2 }
 0x36f   : > { %3450 = vmatmul.mubr.msk.bf16.vlgmr.msra.gmra.mxu1 %vm1072_vm4, %v3026_v1 }
 0x370   : > { %3185 = vmatpush3.bf16.msra.mxu1 %v3688_v3 }
 0x371   : > { %3186 = vmatprep.subr.bf16.mxu1 %v3689_v16 }
 0x374   : > { %3187 = vmatpush3.bf16.msra.mxu1 %v3690_v17 }
 0x375   : > { %3188 = vmatprep.subr.bf16.mxu1 %v3691_v18 }
 0x378   : > { %3189 = vmatpush3.bf16.msra.mxu1 %v3692_v22 }
 0x379   : > { %3190 = vmatprep.subr.bf16.mxu1 %v3693_v26 }
 0x37c   : > { %3191 = vmatpush3.bf16.msra.mxu1 %v3694_v28 }
 0x37d   : > { %3192 = vmatprep.subr.bf16.mxu1 %v3695_v30 }
 0x380   : > { %3193 = vmatpush3.bf16.msra.mxu1 %v3696_v33 }
 0x381   : > { %3194 = vmatprep.subr.bf16.mxu1 %v3697_v37 }
 0x384   : > { %3195 = vmatpush3.bf16.msra.mxu1 %v3698_v39 }
 0x385   : > { %3196 = vmatprep.subr.bf16.mxu1 %v3699_v40 }
 0x388   : > { %3197 = vmatpush3.bf16.msra.mxu1 %v3700_v43  ;;  %v3062_v43 = vld [vmem:[%s4549_s3 + $0x7] sm:$0x1] }
 0x389   : > { %3198 = vmatprep.subr.bf16.mxu1 %v3702_v46  ;;  %v3064_v46 = vld [vmem:[%s4549_s3 + $0x8] sm:$0x1] }
 0x38c   : > { %3199 = vmatpush3.bf16.msra.mxu1 %v3703_v48  ;;  %v3706_v48 = vld [vmem:[%s4553_s7 + $0x38] sm:$0xff]  }
 0x38d   : > { %3485 = vmatprep.subr.bf16.mxu1 %v3815_v7 }
 0x407   : > { %v4214_v4 = vpop.f32.mrf.mxu1  ;;  %v4216_v5 = vpop.f32.mrf.mxu0 }
 0x409   : > { %v3409_v8 = vpop.f32.mrf.mxu1  ;;  %v3433_v9 = vpop.f32.mrf.mxu0 }
 0x40b   : > { %v1271_v10 = vpop.f32.mrf.mxu1  ;;  %v1451_v13 = vpop.f32.mrf.mxu0 }
 0x40d   : > { %v3410_v14 = vpop.f32.mrf.mxu1  ;;  %v3434_v15 = vpop.f32.mrf.mxu0 }
 0x40f   : > { %v1313_v20 = vpop.f32.mrf.mxu1  ;;  %v1538_v21 = vpop.f32.mrf.mxu0 }
 0x411   : > { %v3415_v23 = vpop.f32.mrf.mxu1  ;;  %v3445_v24 = vpop.f32.mrf.mxu0 }
 0x413   : > { %v1316_v27 = vpop.f32.mrf.mxu1  ;;  %v1541_v6 = vpop.f32.mrf.mxu0 }
 0x414   : > { %v1703_v27 = vld [vmem:[%s4554_s8 + $0x6] sm:$0x7] }
 0x415   : > { %v3416_v11 = vpop.f32.mrf.mxu1  ;;  %v3446_v29 = vpop.f32.mrf.mxu0  ;;  %v1707_v28 = vrot.slane %v1703_v27, %v3951_v12  ;;  %v1911_v12 = vld [vmem:[%s4549_s3] sm:$0x1] }
 0x417   : > { %v1358_v31 = vpop.f32.mrf.mxu1  ;;  %v1628_v51 = vpop.f32.mrf.mxu0 }
 0x418   : > { %v3638_v32 = vpack.i.bf16 %v1358_v31, %v1538_v21  ;;  %v1666_v53 = vpack.c.bf16 %v1628_v51, %v1628_v51  ;;  %v3712_v51 = vld [vmem:[%s4553_s7 + $0xb8] sm:$0xff]  }
 0x419   : > { %v3421_v34 = vpop.f32.mrf.mxu1  ;;  %v3457_v54 = vpop.f32.mrf.mxu0 }
 0x41a   : > { %3639 = vrot.lane.b32.xlu0 %v3638_v32, %s4559_s29  ;;  %3464 = vmatmul.mubr.msk.bf16.vlgmr.msra.gmra.mxu0 %vm1075_vm5, %v1666_v53  ;;  %s4569_s29 = smov 96   ;;  %v1903_v34 = vrot.slane %v1703_v27, %v3957_v19  ;;  %v3050_v19 = vld [vmem:[%s4549_s3 + $0x1] sm:$0x1]  ;;  %v3715_v53 = vld [vmem:[%s4553_s7 + $0xf0] sm:$0xff]   ;;  %v3709_v54 = vld [vmem:[%s4553_s7 + $0x68] sm:$0xff]  }
 0x41b   : > { %v1361_v35 = vpop.f32.mrf.mxu1  ;;  %v1631_v56 = vpop.f32.mrf.mxu0  ;;  %3469 = vmatprep.mubr.msk.bf16.mxu0 %vm3816_vm2, %v3815_v7 }
 0x41c   : > { %v3719_v56 = vld [vmem:[%s4553_s7 + $0xe8] sm:$0xff]  }
 0x41d   : > { %v3422_v36 = vpop.f32.mrf.mxu1  ;;  %v3458_v58 = vpop.f32.mrf.mxu0 }
 0x41e   : > { %v1908_v36 = vrot.slane %v1703_v27, %v3960_v25  ;;  %v3058_v25 = vld [vmem:[%s4549_s3 + $0x5] sm:$0x1] }
 0x41f   : > { %v1403_v38 = vpop.f32.mrf.mxu1  ;;  %v3713_v58 = vld [vmem:[%s4553_s7 + $0x60] sm:$0xff]  }
 0x420   : > { %v3736_v27 = vld [vmem:[%s4553_s7 + $0xc0] sm:$0xff]  }
 0x421   : > { %v3427_v42 = vpop.f32.mrf.mxu1 }
 0x422   : > { %v3052_v42 = vld [vmem:[%s4549_s3 + $0x2] sm:$0x1] }
 0x423   : > { %v1406_v44 = vpop.f32.mrf.mxu1 }
 0x424   : > { %v3056_v44 = vld [vmem:[%s4549_s3 + $0x4] sm:$0x1] }
 0x425   : > { %v3428_v45 = vpop.f32.mrf.mxu1 }
 0x426   : > { %v3060_v45 = vld [vmem:[%s4549_s3 + $0x6] sm:$0x1] }
 0x427   : > { %v1493_v47 = vpop.f32.mrf.mxu1 }
 0x428   : > { %v3643_v50 = vpack.i.bf16 %v1313_v20, %v1493_v47  ;;  %v3705_v47 = vld [vmem:[%s4553_s7 + $0x78] sm:$0xff]  }
 0x429   : > { %v3439_v52 = vpop.f32.mrf.mxu1 }
 0x42a   : > { %3644 = vrot.lane.b32.xlu1 %v3643_v50, %s4568_s25  ;;  %v3711_v50 = vld [vmem:[%s4553_s7 + $0xf8] sm:$0xff]   ;;  %v3708_v52 = vld [vmem:[%s4553_s7 + $0x30] sm:$0xff]  }
 0x42b   : > { %v1496_v55 = vpop.f32.mrf.mxu1 }
 0x42c   : > { %v3716_v55 = vld [vmem:[%s4553_s7 + $0xb0] sm:$0xff]  }
 0x42d   : > { %v3440_v57 = vpop.f32.mrf.mxu1 }
 0x42e   : > { %v3710_v57 = vld [vmem:[%s4553_s7 + $0x28] sm:$0xff]  }
 0x42f   : > { %v1583_v59 = vpop.f32.mrf.mxu1 }
 0x430   : > { %v3648_v60 = vpack.i.bf16 %v1403_v38, %v1583_v59  ;;  %v3720_v59 = vld [vmem:[%s4553_s7 + $0xa8] sm:$0xff]  }
 0x431   : > { %v3451_v61 = vpop.f32.mrf.mxu1 }
 0x432   : > { %3649 = vrot.lane.b32.xlu1 %v3648_v60, %s4569_s29  ;;  %v3723_v60 = vld [vmem:[%s4553_s7 + $0xe0] sm:$0xff]  }
 0x433   : > { %v1586_v62 = vpop.f32.mrf.mxu1  ;;  %v3714_v61 = vld [vmem:[%s4553_s7 + $0x20] sm:$0xff]  }
 0x434   : > { %v3717_v62 = vld [vmem:[%s4553_s7 + $0x58] sm:$0xff]  }
 0x435   : > { %v3452_v63 = vpop.f32.mrf.mxu1 }
 0x436   : > { %v3724_v63 = vld [vmem:[%s4553_s7 + $0xa0] sm:$0xff]  }
 0x48c   : > { %v3640_v3 = vpop.permute.xlu0 %3639 }
 0x48d   : > { %v3642_v10 = vunpack.i.h.bf16 %v3640_v3  ;;  %v3641_v13 = vunpack.i.l.bf16 %v3640_v3  ;;  %v3728_v3 = vld [vmem:[%s4553_s7 + $0x98] sm:$0xff]  }
 0x49c   : > { %v3645_v0 = vpop.permute.xlu1 %3644 }
 0x49d   : > { %v3647_v1 = vunpack.i.h.bf16 %v3645_v0  ;;  %v3646_v2 = vunpack.i.l.bf16 %v3645_v0  ;;  %v3727_v0 = vld [vmem:[%s4553_s7 + $0xd8] sm:$0xff]  }
 0x49f   : > { %v1658_v8 = vsel %vm1075_vm5, %v4214_v4, %v3647_v1  ;;  %v1661_v9 = vsel %vm1075_vm5, %v4216_v5, %v3646_v2  ;;  %v3718_v1 = vld [vmem:[%s4553_s7 + $0x18] sm:$0xff]   ;;  %v3721_v2 = vld [vmem:[%s4553_s7 + $0x50] sm:$0xff]  }
 0x4a0   : > { %v1659_v17 = vsel %vm555_vm3, %v1658_v8, %v3642_v10  ;;  %v1662_v18 = vsel %vm555_vm3, %v1661_v9, %v3641_v13  ;;  %v3722_v8 = vld [vmem:[%s4553_s7 + $0x10] sm:$0xff]   ;;  %v3725_v9 = vld [vmem:[%s4553_s7 + $0x48] sm:$0xff]   ;;  %v3729_v13 = vld [vmem:[%s4553_s7 + $0x40] sm:$0xff]  }
 0x4a1   : > { %v3726_v10 = vld [vmem:[%s4553_s7 + $0x8] sm:$0xff]  }
 0x4a4   : > { %v3650_v14 = vpop.permute.xlu1 %3649 }
 0x4a5   : > { %v3652_v15 = vunpack.i.h.bf16 %v3650_v14  ;;  %v3651_v16 = vunpack.i.l.bf16 %v3650_v14  ;;  %v3730_v14 = vld [vmem:[%s4553_s7] sm:$0xff]  }
 0x4a7   : > { %v1660_v20 = vsel %vm1086_vm8, %v1659_v17, %v3652_v15  ;;  %v1663_v21 = vsel %vm1086_vm8, %v1662_v18, %v3651_v16  ;;  %v3731_v15 = vld [vmem:[%s4553_s7 + $0xd0] sm:$0xff]  }
 0x4a8   : > { %v1664_v22 = vpack.c.bf16 %v1660_v20, %v1660_v20  ;;  %v1665_v23 = vpack.c.bf16 %v1663_v21, %v1663_v21  ;;  %v3732_v18 = vld [vmem:[%s4553_s7 + $0x90] sm:$0xff]  }
 0x4aa   : > { %1851 = vmatprep.mubr.bf16.mxu1 %v1665_v23 }
 0x4ab   : > { %1852 = vmatmul.mubr.bf16.vlgmr.msra.gmra.mxu1 %v1664_v22  ;;  %v3733_v22 = vld [vmem:[%s4553_s7 + $0xc8] sm:$0xff]  }
 0x4ac   : > { %3487 = vmatprep.mubr.msk.bf16.mxu1 %vm3816_vm2, %v3815_v7 }
 0x4da   : > { %v1893_v4 = vpop.f32.mrf.mxu0 }
 0x4dc   : > { %v3465_v5 = vpop.f32.mrf.mxu0 }
 0x4dd   : > { %v3735_v5 = vld [vmem:[%s4553_s7 + $0x88] sm:$0xff]  }
 0x4de   : > { %v1896_v24 = vpop.f32.mrf.mxu0 }
 0x4e0   : > { %v3466_v26 = vpop.f32.mrf.mxu0 }
 0x56b   : > { %v3200_v6 = vpop.f32.mrf.mxu1 }
 0x56d   : > { %v3201_v11 = vpop.f32.mrf.mxu1 }
 0x56e   : > { %v3202_v29 = vadd.f32 %v3201_v11, %v3200_v6  ;;  %v3738_v11 = vld [vmem:[%s4553_s7 + $0x80] sm:$0xff]  }
 0x56f   : > { %v3203_v30 = vpop.f32.mrf.mxu1 }
 0x570   : > { %v1854_v31 = vadd.f32 %v3202_v29, %v1707_v28 }
 0x571   : > { %v3204_v32 = vpop.f32.mrf.mxu1 }
 0x572   : > { %v1894_v33 = vadd.f32 %v1893_v4, %v1854_v31 }
 0x574   : > { %v1899_v35 = vmax.f32 %v1894_v33, 0.0 }
 0x576   : > { %v1904_v37 = vmul.f32 %v1903_v34, %v1899_v35 }
 0x578   : > { %v1909_v38 = vadd.f32 %v1908_v36, %v1904_v37 }
 0x57a   : > { %v1910_v39 = vpack.c.bf16 %v1909_v38, %v1909_v38 }
 0x57c   : > { %v1918_v40 = vsel %vm1916_vm10, %v1910_v39, 0 }
 0x57d   : > { %3468 = vmatpush3.bf16.msra.mxu0 %v1918_v40  ;;  %3486 = vmatpush3.bf16.msra.mxu1 %v1918_v40 }
 0x57e   : > { %3473 = vmatprep.subr.bf16.mxu0 %v3815_v7  ;;  %3497 = vmatprep.subr.bf16.mxu1 %v3815_v7 }
 0x580   : > { %3470 = vmatmul.mubr.msk.bf16.vlgmr.msra.gmra.mxu0 %vm1912_vm11, %v1911_v12  ;;  %3488 = vmatmul.mubr.msk.bf16.vlgmr.msra.gmra.mxu1 %vm1912_vm11, %v3054_v41 }
 0x581   : > { %3474 = vmatpush3.bf16.msra.mxu0 %v1918_v40  ;;  %3498 = vmatpush3.bf16.msra.mxu1 %v1918_v40 }
 0x582   : > { %3475 = vmatprep.mubr.msk.bf16.mxu0 %vm3816_vm2, %v3815_v7  ;;  %3479 = vmatprep.subr.bf16.mxu0 %v3815_v7 }
 0x583   : > { %3499 = vmatprep.mubr.msk.bf16.mxu1 %vm3816_vm2, %v3815_v7  ;;  %3509 = vmatprep.subr.bf16.mxu1 %v3815_v7 }
 0x588   : > { %3476 = vmatmul.mubr.msk.bf16.vlgmr.msra.gmra.mxu0 %vm1912_vm11, %v3050_v19  ;;  %3500 = vmatmul.mubr.msk.bf16.vlgmr.msra.gmra.mxu1 %vm1912_vm11, %v3058_v25 }
 0x589   : > { %3480 = vmatpush3.bf16.msra.mxu0 %v1918_v40  ;;  %3510 = vmatpush3.bf16.msra.mxu1 %v1918_v40 }
 0x58a   : > { %3481 = vmatprep.mubr.msk.bf16.mxu0 %vm3816_vm2, %v3815_v7  ;;  %3491 = vmatprep.subr.bf16.mxu0 %v3815_v7 }
 0x58b   : > { %3511 = vmatprep.mubr.msk.bf16.mxu1 %vm3816_vm2, %v3815_v7  ;;  %3227 = vmatprep.subr.bf16.mxu1 %v3705_v47 }
 0x590   : > { %3482 = vmatmul.mubr.msk.bf16.vlgmr.msra.gmra.mxu0 %vm1912_vm11, %v3052_v42  ;;  %3512 = vmatmul.mubr.msk.bf16.vlgmr.msra.gmra.mxu1 %vm1912_vm11, %v3062_v43 }
 0x591   : > { %3492 = vmatpush3.bf16.msra.mxu0 %v1918_v40  ;;  %3493 = vmatprep.mubr.msk.bf16.mxu0 %vm3816_vm2, %v3815_v7 }
 0x592   : > { %3503 = vmatprep.subr.bf16.mxu0 %v3815_v7  ;;  %3228 = vmatpush3.bf16.msra.mxu1 %v3706_v48 }
 0x593   : > { %3229 = vmatprep.subr.bf16.mxu1 %v3707_v49 }
 0x596   : > { %3230 = vmatpush3.bf16.msra.mxu1 %v3708_v52 }
 0x597   : > { %3231 = vmatprep.subr.bf16.mxu1 %v3709_v54 }
 0x598   : > { %3494 = vmatmul.mubr.msk.bf16.vlgmr.msra.gmra.mxu0 %vm1912_vm11, %v3056_v44 }
 0x599   : > { %3504 = vmatpush3.bf16.msra.mxu0 %v1918_v40  ;;  %3505 = vmatprep.mubr.msk.bf16.mxu0 %vm3816_vm2, %v3815_v7 }
 0x59a   : > { %3515 = vmatprep.subr.bf16.mxu0 %v3815_v7  ;;  %3232 = vmatpush3.bf16.msra.mxu1 %v3710_v57 }
 0x59b   : > { %3233 = vmatprep.subr.bf16.mxu1 %v3713_v58 }
 0x59e   : > { %3234 = vmatpush3.bf16.msra.mxu1 %v3714_v61  ;;  %v3734_v61 = vld [vmem:[%s4553_s7 + $0x118] sm:$0xff]  }
 0x59f   : > { %3235 = vmatprep.subr.bf16.mxu1 %v3717_v62 }
 0x5a0   : > { %3506 = vmatmul.mubr.msk.bf16.vlgmr.msra.gmra.mxu0 %vm1912_vm11, %v3060_v45 }
 0x5a1   : > { %3516 = vmatpush3.bf16.msra.mxu0 %v1918_v40  ;;  %3517 = vmatprep.mubr.msk.bf16.mxu0 %vm3816_vm2, %v3815_v7 }
 0x5a2   : > { %3249 = vmatprep.subr.bf16.mxu0 %v3711_v50  ;;  %3236 = vmatpush3.bf16.msra.mxu1 %v3718_v1 }
 0x5a3   : > { %3237 = vmatprep.subr.bf16.mxu1 %v3721_v2 }
 0x5a6   : > { %3238 = vmatpush3.bf16.msra.mxu1 %v3722_v8 }
 0x5a7   : > { %3239 = vmatprep.subr.bf16.mxu1 %v3725_v9 }
 0x5a8   : > { %3518 = vmatmul.mubr.msk.bf16.vlgmr.msra.gmra.mxu0 %vm1912_vm11, %v3064_v46 }
 0x5a9   : > { %3250 = vmatpush3.bf16.msra.mxu0 %v3712_v51 }
 0x5aa   : > { %3251 = vmatprep.subr.bf16.mxu0 %v3715_v53  ;;  %3240 = vmatpush3.bf16.msra.mxu1 %v3726_v10  ;;  %v3739_v10 = vld [vmem:[%s4553_s7 + $0x108] sm:$0xff]  }
 0x5ab   : > { %3241 = vmatprep.subr.bf16.mxu1 %v3729_v13  ;;  %v3741_v13 = vld [vmem:[%s4555_s9 + $0x38] sm:$0xff]  }
 0x5ad   : > { %3252 = vmatpush3.bf16.msra.mxu0 %v3716_v55 }
 0x5ae   : > { %3253 = vmatprep.subr.bf16.mxu0 %v3719_v56  ;;  %3242 = vmatpush3.bf16.msra.mxu1 %v3730_v14  ;;  %v3740_v14 = vld [vmem:[%s4553_s7 + $0x100] sm:$0xff]  }
 0x5af   : > { %3521 = vmatprep.subr.bf16.mxu1 %v3815_v7 }
 0x5b1   : > { %3254 = vmatpush3.bf16.msra.mxu0 %v3720_v59 }
 0x5b2   : > { %3255 = vmatprep.subr.bf16.mxu0 %v3723_v60 }
 0x5b5   : > { %3256 = vmatpush3.bf16.msra.mxu0 %v3724_v63  ;;  %v3737_v63 = vld [vmem:[%s4553_s7 + $0x110] sm:$0xff]  }
 0x5b6   : > { %3257 = vmatprep.subr.bf16.mxu0 %v3727_v0 }
 0x5b9   : > { %3258 = vmatpush3.bf16.msra.mxu0 %v3728_v3 }
 0x5ba   : > { %3259 = vmatprep.subr.bf16.mxu0 %v3731_v15  ;;  %v3742_v15 = vld [vmem:[%s4555_s9 + $0x30] sm:$0xff]  }
 0x5bd   : > { %3260 = vmatpush3.bf16.msra.mxu0 %v3732_v18  ;;  %v3744_v18 = vld [vmem:[%s4555_s9 + $0x20] sm:$0xff]  }
 0x5be   : > { %3261 = vmatprep.subr.bf16.mxu0 %v3733_v22  ;;  %v3747_v22 = vld [vmem:[%s4555_s9 + $0x8] sm:$0xff]  }
 0x5c1   : > { %3262 = vmatpush3.bf16.msra.mxu0 %v3735_v5 }
 0x5c2   : > { %3263 = vmatprep.subr.bf16.mxu0 %v3736_v27 }
 0x5c5   : > { %3264 = vmatpush3.bf16.msra.mxu0 %v3738_v11 }
 0x5c6   : > { %3533 = vmatprep.subr.bf16.mxu0 %v3815_v7 }
 0x640   : > { %v1954_v16 = vpop.f32.mrf.mxu0  ;;  %v2089_v17 = vpop.f32.mrf.mxu1 }
 0x642   : > { %v3471_v20 = vpop.f32.mrf.mxu0  ;;  %v3489_v21 = vpop.f32.mrf.mxu1 }
 0x643   : > { %v3745_v20 = vld [vmem:[%s4555_s9 + $0x18] sm:$0xff]   ;;  %v3746_v21 = vld [vmem:[%s4555_s9 + $0x10] sm:$0xff]  }
 0x644   : > { %v1957_v23 = vpop.f32.mrf.mxu0  ;;  %v2092_v4 = vpop.f32.mrf.mxu1 }
 0x645   : > { %v3748_v23 = vld [vmem:[%s4555_s9] sm:$0xff]  }
 0x646   : > { %v3472_v24 = vpop.f32.mrf.mxu0  ;;  %v3490_v26 = vpop.f32.mrf.mxu1 }
 0x648   : > { %v1999_v6 = vpop.f32.mrf.mxu0  ;;  %v2179_v28 = vpop.f32.mrf.mxu1 }
 0x649   : > { %v3653_v29 = vpack.i.bf16 %v1999_v6, %v2089_v17  ;;  %v3743_v17 = vld [vmem:[%s4555_s9 + $0x28] sm:$0xff]  }
 0x64a   : > { %v3477_v30 = vpop.f32.mrf.mxu0  ;;  %v3501_v31 = vpop.f32.mrf.mxu1  ;;  %v2417_v6 = vld [vmem:[%s4554_s8 + $0x9] sm:$0x7] }
 0x64b   : > { %3654 = vrot.lane.b32.xlu0 %v3653_v29, %s4570_s30 }
 0x64c   : > { %v2002_v32 = vpop.f32.mrf.mxu0  ;;  %v2182_v33 = vpop.f32.mrf.mxu1 }
 0x64e   : > { %v3478_v34 = vpop.f32.mrf.mxu0  ;;  %v3502_v35 = vpop.f32.mrf.mxu1 }
 0x64f   : > { %v2759_v35 = vrot.slane %v2417_v6, 1 }
 0x650   : > { %v2269_v36 = vpop.f32.mrf.mxu1  ;;  %v2044_v37 = vpop.f32.mrf.mxu0 }
 0x651   : > { %v3658_v38 = vpack.i.bf16 %v2179_v28, %v2269_v36 }
 0x652   : > { %v3513_v39 = vpop.f32.mrf.mxu1  ;;  %v3483_v40 = vpop.f32.mrf.mxu0 }
 0x653   : > { %3659 = vrot.lane.b32.xlu1 %v3658_v38, %s4570_s30  ;;  %v2762_v38 = vrot.slane %v2417_v6, 2  ;;  %s3111_s30 = sshll.u32 %s3907_s21, 4  ;;  %s3759_s21 = scalar_lea.vmem %s3758_s0, 32 }
 0x654   : > { %v2272_v12 = vpop.f32.mrf.mxu1  ;;  %v2047_v41 = vpop.f32.mrf.mxu0  ;;  %s2896_s29 = scalar_lea.hbm %s4557_s11, %s3111_s30  ;;  %p3761_p1 = scmp.lt.s32.totalorder %s3759_s21, %s3753_s16 }
 0x656   : > { %v3514_v19 = vpop.f32.mrf.mxu1  ;;  %v3484_v25 = vpop.f32.mrf.mxu0  ;;  %p3762_p2 = por %p3761_p1, %p3760_p0 }
 0x657   : > { %v2783_v25 = vld [vmem:[%s4556_s10] sm:$0x1] }
 0x658   : > { %v2134_v42 = vpop.f32.mrf.mxu0  ;;  %p3763_p3 = pnand %p3762_p2, %p3756_p13 }
 0x65a   : > { %v3495_v43 = vpop.f32.mrf.mxu0 }
 0x65c   : > { %v2137_v44 = vpop.f32.mrf.mxu0 }
 0x65e   : > { %v3496_v45 = vpop.f32.mrf.mxu0 }
 0x660   : > { %v2224_v46 = vpop.f32.mrf.mxu0 }
 0x662   : > { %v3507_v47 = vpop.f32.mrf.mxu0 }
 0x664   : > { %v2227_v48 = vpop.f32.mrf.mxu0 }
 0x666   : > { %v3508_v49 = vpop.f32.mrf.mxu0 }
 0x668   : > { %v2314_v50 = vpop.f32.mrf.mxu0 }
 0x66a   : > { %v3519_v51 = vpop.f32.mrf.mxu0 }
 0x66c   : > { %v2317_v52 = vpop.f32.mrf.mxu0 }
 0x66e   : > { %v3520_v53 = vpop.f32.mrf.mxu0 }
 0x6bd   : > { %v3655_v54 = vpop.permute.xlu0 %3654 }
 0x6be   : > { %v3657_v55 = vunpack.i.h.bf16 %v3655_v54  ;;  %v3656_v56 = vunpack.i.l.bf16 %v3655_v54 }
 0x6c0   : > { %v2336_v57 = vsel %vm555_vm3, %v1954_v16, %v3657_v55  ;;  %v2337_v58 = vsel %vm555_vm3, %v2044_v37, %v3656_v56  ;;  %v2344_v16 = vpack.c.bf16 %v2314_v50, %v2314_v50 }
 0x6c1   : > { %v2340_v59 = vpack.c.bf16 %v2336_v57, %v2336_v57  ;;  %v2341_v60 = vpack.c.bf16 %v2337_v58, %v2337_v58 }
 0x6c3   : > { %2669 = vmatprep.mubr.bf16.mxu1 %v2341_v60 }
 0x6c4   : > { %2670 = vmatmul.mubr.bf16.vlgmr.msra.gmra.mxu1 %v2340_v59 }
 0x6c5   : > { %3522 = vmatpush3.bf16.msra.mxu1 %v3734_v61  ;;  %v3660_v62 = vpop.permute.xlu1 %3659  ;;  %3529 = vmatprep.mubr.msk.bf16.mxu1 %vm3816_vm2, %v3815_v7 }
 0x6c6   : > { %v3662_v0 = vunpack.i.h.bf16 %v3660_v62  ;;  %v3661_v1 = vunpack.i.l.bf16 %v3660_v62  ;;  %3523 = vmatprep.subr.bf16.mxu1 %v3815_v7 }
 0x6c8   : > { %v2338_v2 = vsel %vm555_vm3, %v2134_v42, %v3662_v0  ;;  %v2339_v3 = vsel %vm555_vm3, %v2224_v46, %v3661_v1 }
 0x6c9   : > { %v2342_v8 = vpack.c.bf16 %v2338_v2, %v2338_v2  ;;  %v2343_v9 = vpack.c.bf16 %v2339_v3, %v2339_v3  ;;  %3524 = vmatpush3.bf16.msra.mxu1 %v3737_v63 }
 0x6ca   : > { %3525 = vmatprep.subr.bf16.mxu1 %v3815_v7 }
 0x6cb   : > { %2709 = vmatprep.mubr.bf16.mxu0 %v2343_v9 }
 0x6cc   : > { %2710 = vmatmul.mubr.bf16.vlgmr.msra.gmra.mxu0 %v2342_v8 }
 0x6cd   : > { %3526 = vmatpush3.bf16.msra.mxu1 %v3739_v10  ;;  %3534 = vmatpush3.bf16.msra.mxu0 %v3741_v13 }
 0x6ce   : > { %3527 = vmatprep.subr.bf16.mxu1 %v3815_v7  ;;  %3535 = vmatprep.subr.bf16.mxu0 %v3815_v7 }
 0x6cf   : > { %3549 = vmatprep.mubr.msk.bf16.mxu0 %vm3816_vm2, %v3815_v7 }
 0x6d1   : > { %3528 = vmatpush3.bf16.msra.mxu1 %v3740_v14  ;;  %3536 = vmatpush3.bf16.msra.mxu0 %v3742_v15 }
 0x6d2   : > { %3537 = vmatprep.subr.bf16.mxu0 %v3815_v7 }
 0x6d4   : > { %3530 = vmatmul.mubr.msk.bf16.vlgmr.msra.gmra.mxu1 %vm555_vm3, %v2344_v16 }
 0x6d5   : > { %3538 = vmatpush3.bf16.msra.mxu0 %v3743_v17 }
 0x6d6   : > { %3539 = vmatprep.subr.bf16.mxu0 %v3815_v7 }
 0x6d9   : > { %3540 = vmatpush3.bf16.msra.mxu0 %v3744_v18 }
 0x6da   : > { %3541 = vmatprep.subr.bf16.mxu0 %v3815_v7 }
 0x6dd   : > { %3542 = vmatpush3.bf16.msra.mxu0 %v3745_v20 }
 0x6de   : > { %3543 = vmatprep.subr.bf16.mxu0 %v3815_v7 }
 0x6e1   : > { %3544 = vmatpush3.bf16.msra.mxu0 %v3746_v21 }
 0x6e2   : > { %3545 = vmatprep.subr.bf16.mxu0 %v3815_v7 }
 0x6e5   : > { %3546 = vmatpush3.bf16.msra.mxu0 %v3747_v22 }
 0x6e6   : > { %3547 = vmatprep.subr.bf16.mxu0 %v3815_v7 }
 0x6e9   : > { %3548 = vmatpush3.bf16.msra.mxu0 %v3748_v23 }
 0x784   : > { %v3243_v4 = vpop.f32.mrf.mxu1 }
 0x786   : > { %v3244_v5 = vpop.f32.mrf.mxu1 }
 0x787   : > { %v3245_v27 = vadd.f32 %v3244_v5, %v3243_v4 }
 0x788   : > { %v3246_v24 = vpop.f32.mrf.mxu1 }
 0x789   : > { %v2672_v29 = vadd.f32 %v3245_v27, %v2417_v6 }
 0x78a   : > { %v3247_v26 = vpop.f32.mrf.mxu1 }
 0x78c   : > { %v3265_v28 = vpop.f32.mrf.mxu0 }
 0x78e   : > { %v3266_v11 = vpop.f32.mrf.mxu0 }
 0x78f   : > { %v3267_v30 = vadd.f32 %v3266_v11, %v3265_v28 }
 0x790   : > { %v3268_v31 = vpop.f32.mrf.mxu0 }
 0x791   : > { %v2712_v7 = vadd.f32 %v3267_v30, %v2672_v29 }
 0x792   : > { %v3269_v32 = vpop.f32.mrf.mxu0 }
 0x794   : > { %v2751_v33 = vpop.f32.mrf.mxu1 }
 0x795   : > { %v2752_v34 = vadd.f32 %v2751_v33, %v2712_v7 }
 0x796   : > { %v3531_v36 = vpop.f32.mrf.mxu1 }
 0x797   : > { %v2757_v37 = vmax.f32 %v2752_v34, 0.0 }
 0x798   : > { %v2754_v39 = vpop.f32.mrf.mxu1 }
 0x799   : > { %v2761_v40 = vmul.f32 %v2759_v35, %v2757_v37 }
 0x79a   : > { %v3532_v12 = vpop.f32.mrf.mxu1 }
 0x79b   : > { %v2764_v41 = vadd.f32 %v2762_v38, %v2761_v40 }
 0x79d   : > { %v2766_v19 = vpack.c.bf16 %v2764_v41, %v2764_v41 }
 0x79f   : > { %3550 = vmatmul.mubr.bf16.vlgmr.msra.gmra.mxu0 %v2766_v19 }
 0x85f   : > { %v2866_v42 = vpop.f32.mrf.mxu0 }
 0x860   : > { %v2867_v43 = vadd.f32 %v2866_v42, %v2783_v25 }
 0x861   : > { %v3551_v44 = vpop.f32.mrf.mxu0 }
 0x862   : > { %v2873_v45 = vsel %vm2872_vm12, %v2867_v43, -inf }
 0x863   : > { %2874 = vmax.xlane.f32.xlu0 %v2873_v45  ;;  %v2869_v46 = vpop.f32.mrf.mxu0 }
 0x865   : > { %v3552_v47 = vpop.f32.mrf.mxu0 }
 0x8ec   : > { %v2875_v48 = vpop.xlane.xlu0 %2874 }
 0x8ed   : > { %v2876_v49 = vsub.f32 %v2867_v43, %v2875_v48 }
 0x8ef   : > { %v2877_v50 = vmul.f32 1.442695, %v2876_v49 }
 0x8f1   : > { %3749 = vpow2.f32 %v2877_v50 }
 0x8fe   : > { %v3750_v51 = vpop.eup %3749 }
 0x8ff   : > { %v2879_v52 = vsel %vm2872_vm12, %v3750_v51, 0.0 }
 0x900   : > { %2880 = vadd.xlane.f32.xlu1 %v2879_v52 }
 0x989   : > { %v2881_v53 = vpop.xlane.xlu1 %2880 }
 0x98a   : > { %3751 = vrcp.f32 %v2881_v53 }
 0x997   : > { %v3752_v54 = vpop.eup %3751 }
 0x998   : > { %v2883_v55 = vmul.f32 %v3752_v54, %v3750_v51 }
 0x99a   : > { %2884 = vst.msk [vmem:[%s378_s12] sm:$0x1] %vm2872_vm12, %v2883_v55 }
 0x99b   : > { %3766 = shalt.err (!%p3763_p3)
}
 0x99c   : > { %s3767_s13 = scalar_lea.hbm %s2896_s29, 16  ;;  %s3771_s12 = scalar_lea.hbm %s4557_s11, 32 }
 0x99d   : > { %p3768_p4 = scmp.ne.s32.totalorder %s2896_s29, %s3767_s13  ;;  %p3772_p9 = scmp.lt.s32.totalorder %s2896_s29, %s4557_s11 }
 0x99e   : > { %p3773_p10 = scmp.lt.s32.totalorder %s3771_s12, %s3767_s13 }
 0x99f   : > { %p3769_p7 = pnand %p3768_p4, %p3924_p5 }
 0x9a0   : > { %p3774_p11 = por %p3773_p10, %p3772_p9 }
 0x9a1   : > { %p3770_p8 = pneg %p3769_p7 }
 0x9a3   : > { %p3775_p12 = pnand %p3774_p11, %p3770_p8 }
 0x9a5   : > { %3778 = shalt.err (!%p3775_p12)
}
 0x9a6   : > { %3554 = dma.vmem_to_hbm [thread:$0]  (%p3924_p5), %s2899_s14, 16, %s2896_s29, %s2886_s15  }
 0x9a7 PF: > { %p3560_p13 = scmp.ge.s32.totalorder %s3813_s20, 2  ;;  %s2910_s0 = sand.u32 1, %s3801_s17  }
 0x9a8   : > { %s2911_s16 = scalar_lea.sflag [#allocation3], %s2910_s0 }
 0x9a9   : > { %p3557_p0 = pnand %p3560_p13, %p3928_p6 }
 0x9ab   : > { %p3558_p1 = pneg %p3557_p0 }
 0x9ad   : > { %3796 = dma.done.wait (%p3558_p1), %s2911_s16, 16  }
 0x9ae   : > { %3798 = vsyncadd (%p3558_p1), %s2911_s16, 4294967280  ;;  %p21_p2 = scmp.ge.s32.totalorder %s3911_s23, 4   ;;  %s4571_s17 = smov %s3805_s18 }
 0x9af   : > { %s4572_s18 = smov %s3809_s19  ;;  %s4573_s19 = smov %s3922_s26 }
 0x9b0   : > { %s4574_s20 = smov %s3911_s23  ;;  %23 = sbr.rel (!%p21_p2) target bundleno = 6 (0x6), region = 123 }
 0x9b5   :  { %2915 = vsyncpa [#allocation3], 1 }
 0x9b6   :  { %2917 = vsyncpa [#allocation3 + $0x1], 1 }

</bundles_post_ra>
